<compile_context>
chip_gen: v7x
topology: tpu7x:2x2x1
jax: 0.10.0
libtpu: 0.0.40
codegen_flags: <defaults>
</compile_context>

<pallas_src>
import functools

import jax
import jax.numpy as jnp
from jax.experimental import pallas as pl
from jax.experimental.pallas import tpu as pltpu


# ---------------------------------------------------------------------------
# Kernel
# ---------------------------------------------------------------------------
def cad_kernel(x_ref,
               w1_ref, b1_ref,       # fused layer 1: (D, 512), (1, 512)
               w2_ref, b2_ref,       # block-diag layer 2: (512, 256), (1, 256)
               w3_ref, b3_ref,       # block-diag layer 3: (256, 2), (1, 2)
               pred_ref, att_ref,
               *, fuse_l2):
    bt, t, d = x_ref.shape
    m = bt * t

    # In-kernel bf16 cast (VPU filler next to the MXU); no wrapper HBM pass.
    x = x_ref[...].astype(jnp.bfloat16).reshape(m, d)              # (M, D)

    # Layer 1, both heads fused: one (M, D) @ (D, 512) MXU pass.
    h1 = jnp.dot(x, w1_ref[...], preferred_element_type=jnp.float32) + b1_ref[...]
    h1 = jnp.maximum(h1, 0.0).astype(jnp.bfloat16)                 # (M, 512) [att|cls]

    # Layer 2: block-diagonal fusion on 256-wide MXUs (v6e/v7x); per-head on v5e.
    if fuse_l2:
        h2 = jnp.dot(h1, w2_ref[...], preferred_element_type=jnp.float32) + b2_ref[...]
        h2 = jnp.maximum(h2, 0.0).astype(jnp.bfloat16)             # (M, 256) [att|cls]
    else:
        ha2 = (jnp.dot(h1[:, :256], w2_ref[:256, :128],
                       preferred_element_type=jnp.float32) + b2_ref[:, :128])
        hc2 = (jnp.dot(h1[:, 256:], w2_ref[256:, 128:],
                       preferred_element_type=jnp.float32) + b2_ref[:, 128:])
        h2 = jnp.concatenate([jnp.maximum(ha2, 0.0), jnp.maximum(hc2, 0.0)],
                             axis=1).astype(jnp.bfloat16)          # (M, 256) [att|cls]

    # Layer 3, both heads fused: (M, 256) @ (256, 2); col 0 = att, col 1 = cas.
    l3 = jnp.dot(h2, w3_ref[...], preferred_element_type=jnp.float32) + b3_ref[...]
    att_logit = l3[:, 0:1].reshape(bt, t)
    cas_logit = l3[:, 1:2].reshape(bt, t)

    # Sigmoid in f32; the divide goes to the (otherwise idle) EUP slot.
    att = pl.reciprocal(1.0 + jnp.exp(-att_logit), approx=True)    # (Bt, T)

    # Softmax over the temporal (lane) axis, max-subtracted, exact denominator
    # so each row sums to 1 (cost is negligible: one (Bt, T) divide).
    mmax = jnp.max(cas_logit, axis=-1, keepdims=True)
    e = jnp.exp(cas_logit - mmax)
    cas = e / jnp.sum(e, axis=-1, keepdims=True)

    att_ref[...] = att                                             # lane-dense (Bt, T)
    pred_ref[...] = jnp.sum(att * cas, axis=-1, keepdims=True)     # (Bt, 1)


# ---------------------------------------------------------------------------
# Wrapper helpers
# ---------------------------------------------------------------------------
def _round_up(x, m):
    return -(-x // m) * m


def _tpu_generation():
    """Best-effort TPU generation from device_kind; 0 if unknown."""
    try:
        kind = jax.devices()[0].device_kind.lower()
    except Exception:
        return 0
    for g in (7, 6, 5, 4):
        if ("v%d" % g) in kind or ("tpu%d" % g) in kind:
            return g
    return 0


def _choose_bt(B, T, D, *, target_rows, budget_bytes):
    """Batch-chunk size bt (multiple of 8): big enough to amortize per-step
    overhead / feed the MXU, small enough for VMEM; prefer >=2 grid steps so
    the work can shard across TensorCores (v7x megacore)."""
    # Rough VMEM bytes per row: double-buffered f32 x row + live intermediates.
    per_row = 8 * D + 6 * 1024
    rows = min(target_rows, max(T, budget_bytes // per_row))
    bt = max(8, (max(1, rows // max(T, 1)) // 8) * 8)
    bt = min(bt, _round_up(B, 8))
    while bt > 8 and _round_up(B, bt) // bt < 2:
        bt = max(8, ((bt // 2) // 8) * 8)
    return bt


def _const_spec(arr):
    """Grid-invariant (weight/bias) input: full-array block, single buffer."""
    idx = lambda b: (0, 0)
    try:
        return pl.BlockSpec(arr.shape, idx, pipeline_mode=pl.Buffered(1))
    except TypeError:  # older JAX without pipeline_mode kwarg
        return pl.BlockSpec(arr.shape, idx)


def pack_params(params):
    """One-time packing (call OUTSIDE the jitted forward): fuse the two heads'
    weights, zero-pad the feature dim up to 128, cast matmul operands to bf16."""
    D = params["aw1"].shape[0]
    D_pad = max(D, 128)

    def pad_rows(w):
        return jnp.pad(w, ((0, D_pad - D), (0, 0))) if D_pad != D else w

    # Layer 1: [aw1 | cw1] -> (D_pad, 512)
    w1 = jnp.concatenate([pad_rows(params["aw1"]), pad_rows(params["cw1"])], axis=1)
    b1 = jnp.concatenate([params["ab1"], params["cb1"]], axis=1)          # (1, 512)
    # Layer 2 block-diagonal: [[aw2, 0], [0, cw2]] -> (512, 256)
    z2 = jnp.zeros((256, 128), params["aw2"].dtype)
    w2 = jnp.concatenate(
        [jnp.concatenate([params["aw2"], z2], axis=1),
         jnp.concatenate([z2, params["cw2"]], axis=1)], axis=0)
    b2 = jnp.concatenate([params["ab2"], params["cb2"]], axis=1)          # (1, 256)
    # Layer 3 block-diagonal: [[aw3, 0], [0, cw3]] -> (256, 2)
    z3 = jnp.zeros((128, 1), params["aw3"].dtype)
    w3 = jnp.concatenate(
        [jnp.concatenate([params["aw3"], z3], axis=1),
         jnp.concatenate([z3, params["cw3"]], axis=1)], axis=0)
    b3 = jnp.concatenate([params["ab3"], params["cb3"]], axis=1)          # (1, 2)

    bf = jnp.bfloat16
    return dict(w1=w1.astype(bf), b1=b1,
                w2=w2.astype(bf), b2=b2,
                w3=w3.astype(bf), b3=b3)


def cad_forward(x, packed, bt=None):
    """x: (B, T, D) float32; packed: output of pack_params()."""
    B, T, D = x.shape
    w1, b1 = packed["w1"], packed["b1"]
    w2, b2 = packed["w2"], packed["b2"]
    w3, b3 = packed["w3"], packed["b3"]
    D_pad = w1.shape[0]

    gen = _tpu_generation()
    fuse_l2 = gen >= 6            # block-diag layer-2 fusion only on 256-wide MXUs
    if gen >= 7:                  # 64 MiB physical VMEM, 2 TensorCores
        vmem_limit, target_rows = 48 << 20, 1024
    elif gen in (5, 6):           # 128 MiB physical VMEM
        vmem_limit, target_rows = 96 << 20, 2048
    else:
        vmem_limit, target_rows = None, 1024

    if bt is None:
        budget = ((vmem_limit or (32 << 20)) * 2) // 3
        bt = _choose_bt(B, T, D_pad, target_rows=target_rows, budget_bytes=budget)
    B_pad = _round_up(B, bt)

    # f32 x into the kernel (bf16 cast happens in-kernel). Zero-pad batch to the
    # block size and the feature dim to the packed K (fills the MXU depth).
    if B_pad != B or D_pad != D:
        x = jnp.pad(x, ((0, B_pad - B), (0, 0), (0, D_pad - D)))

    weight_args = (w1, b1, w2, b2, w3, b3)

    grid_spec = pltpu.PrefetchScalarGridSpec(
        num_scalar_prefetch=0,
        grid=(B_pad // bt,),
        in_specs=[pl.BlockSpec((bt, T, D_pad), lambda b: (b, 0, 0))]
                 + [_const_spec(w) for w in weight_args],
        out_specs=[pl.BlockSpec((bt, 1), lambda b: (b, 0)),
                   pl.BlockSpec((bt, T), lambda b: (b, 0))],
        scratch_shapes=[],
    )

    predict, att2d = pl.pallas_call(
        functools.partial(cad_kernel, fuse_l2=fuse_l2),
        out_shape=(jax.ShapeDtypeStruct((B_pad, 1), jnp.float32),
                   jax.ShapeDtypeStruct((B_pad, T), jnp.float32)),
        grid_spec=grid_spec,
        compiler_params=pltpu.CompilerParams(
            dimension_semantics=("parallel",),
            vmem_limit_bytes=vmem_limit),
    )(x, *weight_args)

    # Match the PyTorch output layout: predict (B, 1), att (B, T, 1).
    return predict[:B], att2d[:B, :, None]


# ---------------------------------------------------------------------------
# Parameters & reference
# ---------------------------------------------------------------------------
def init_params(key, len_feature):
    """Deterministic synthetic parameters (Linear weights stored as (in, out))."""
    ks = jax.random.split(key, 6)

    def lin(k, fan_in, fan_out):
        bound = 1.0 / jnp.sqrt(fan_in)
        kw, kb = jax.random.split(k)
        w = jax.random.uniform(kw, (fan_in, fan_out), jnp.float32, -bound, bound)
        b = jax.random.uniform(kb, (1, fan_out), jnp.float32, -bound, bound)
        return w, b

    aw1, ab1 = lin(ks[0], len_feature, 256)
    aw2, ab2 = lin(ks[1], 256, 128)
    aw3, ab3 = lin(ks[2], 128, 1)
    cw1, cb1 = lin(ks[3], len_feature, 256)
    cw2, cb2 = lin(ks[4], 256, 128)
    cw3, cb3 = lin(ks[5], 128, 1)
    return dict(aw1=aw1, ab1=ab1, aw2=aw2, ab2=ab2, aw3=aw3, ab3=ab3,
                cw1=cw1, cb1=cb1, cw2=cw2, cb2=cb2, cw3=cw3, cb3=cb3)


def cad_reference(x, p):
    """Pure-JAX f32 reference (mirrors the PyTorch module, eval mode)."""
    def mlp(h, w1, b1, w2, b2, w3, b3):
        h = jnp.maximum(h @ w1 + b1, 0.0)
        h = jnp.maximum(h @ w2 + b2, 0.0)
        return h @ w3 + b3
    att = jax.nn.sigmoid(mlp(x, p["aw1"], p["ab1"], p["aw2"], p["ab2"],
                             p["aw3"], p["ab3"]))
    cas = jax.nn.softmax(mlp(x, p["cw1"], p["cb1"], p["cw2"], p["cb2"],
                             p["cw3"], p["cb3"]), axis=1)
    predict = (att * cas).sum(axis=1)
    return predict, att


# ---------------------------------------------------------------------------
# Demo / self-test
# ---------------------------------------------------------------------------
if __name__ == "__main__":
    B, T, D = 2, 8, 32          # batch, temporal length, len_feature
    key = jax.random.PRNGKey(0)
    kx, kp = jax.random.split(key)
    x = jax.random.normal(kx, (B, T, D), jnp.float32)
    params = init_params(kp, D)

    packed = pack_params(params)            # one-time weight packing, outside jit
    forward = jax.jit(cad_forward)
    predict, att = forward(x, packed)
    jax.block_until_ready((predict, att))

    ref_pred, ref_att = cad_reference(x, params)
    assert predict.shape == (B, 1) and att.shape == (B, T, 1)
    # bf16 matmul inputs + approx sigmoid reciprocal loosen tolerance vs f32 ref.
    assert jnp.allclose(predict, ref_pred, atol=1e-2, rtol=1e-2)
    assert jnp.allclose(att, ref_att, atol=1e-2, rtol=1e-2)

    print("KERNEL_OK")
</pallas_src>

<mosaic_0001>
module attributes {stable_mosaic.version = 11 : i64} {
  func.func @cad_kernel(%arg0: i32, %arg1: memref<8x8x128xf32, #tpu.memory_space<vmem>>, %arg2: memref<128x512xbf16, #tpu.memory_space<vmem>>, %arg3: memref<1x512xf32, #tpu.memory_space<vmem>>, %arg4: memref<512x256xbf16, #tpu.memory_space<vmem>>, %arg5: memref<1x256xf32, #tpu.memory_space<vmem>>, %arg6: memref<256x2xbf16, #tpu.memory_space<vmem>>, %arg7: memref<1x2xf32, #tpu.memory_space<vmem>>, %arg8: memref<8x1xf32, #tpu.memory_space<vmem>>, %arg9: memref<8x8xf32, #tpu.memory_space<vmem>>) attributes {dimension_semantics = [#tpu.dimension_semantics<parallel>], iteration_bounds = array<i64: 1>, scalar_prefetch = 0 : i64, scratch_operands = 0 : i64, tpu.core_type = #tpu.core_type<tc>, window_params = [{transform_indices = @transform_0, window_bounds = array<i64: 8, 8, 128>}, {pipeline_mode = #tpu.pipeline_mode<synchronous>, transform_indices = @transform_1, window_bounds = array<i64: 128, 512>}, {pipeline_mode = #tpu.pipeline_mode<synchronous>, transform_indices = @transform_2, window_bounds = array<i64: 1, 512>}, {pipeline_mode = #tpu.pipeline_mode<synchronous>, transform_indices = @transform_3, window_bounds = array<i64: 512, 256>}, {pipeline_mode = #tpu.pipeline_mode<synchronous>, transform_indices = @transform_4, window_bounds = array<i64: 1, 256>}, {pipeline_mode = #tpu.pipeline_mode<synchronous>, transform_indices = @transform_5, window_bounds = array<i64: 256, 2>}, {pipeline_mode = #tpu.pipeline_mode<synchronous>, transform_indices = @transform_6, window_bounds = array<i64: 1, 2>}, {transform_indices = @transform_7, window_bounds = array<i64: 8, 1>}, {transform_indices = @transform_8, window_bounds = array<i64: 8, 8>}]} {
    %c0 = arith.constant 0 : index
    %c0_0 = arith.constant 0 : index
    %c0_1 = arith.constant 0 : index
    %0 = vector.load %arg1[%c0, %c0_0, %c0_1] : memref<8x8x128xf32, #tpu.memory_space<vmem>>, vector<8x8x128xf32>
    %1 = arith.truncf %0 : vector<8x8x128xf32> to vector<8x8x128xbf16>
    %2 = vector.shape_cast %1 : vector<8x8x128xbf16> to vector<64x128xbf16>
    %c0_2 = arith.constant 0 : index
    %c0_3 = arith.constant 0 : index
    %3 = vector.load %arg2[%c0_2, %c0_3] : memref<128x512xbf16, #tpu.memory_space<vmem>>, vector<128x512xbf16>
    %cst = arith.constant dense<0.000000e+00> : vector<64x512xf32>
    %4 = tpu.matmul %2, %3, %cst {dimension_numbers = #tpu.dot_dimension_numbers<[1], [0], [0], [1], [0, 0, 1, 1], [], []>} : vector<64x128xbf16>, vector<128x512xbf16>, vector<64x512xf32> -> vector<64x512xf32>
    %c0_4 = arith.constant 0 : index
    %c0_5 = arith.constant 0 : index
    %5 = vector.load %arg3[%c0_4, %c0_5] : memref<1x512xf32, #tpu.memory_space<vmem>>, vector<1x512xf32>
    %6 = vector.broadcast %5 : vector<1x512xf32> to vector<64x512xf32>
    %7 = arith.addf %4, %6 : vector<64x512xf32>
    %cst_6 = arith.constant 0.000000e+00 : f32
    %8 = vector.broadcast %cst_6 : f32 to vector<64x512xf32>
    %9 = arith.maximumf %7, %8 : vector<64x512xf32>
    %10 = arith.truncf %9 : vector<64x512xf32> to vector<64x512xbf16>
    %11 = vector.extract_strided_slice %10 {offsets = [0, 0], sizes = [64, 256], strides = [1, 1]} : vector<64x512xbf16> to vector<64x256xbf16>
    %c0_7 = arith.constant 0 : index
    %c0_8 = arith.constant 0 : index
    %12 = vector.load %arg4[%c0_7, %c0_8] : memref<512x256xbf16, #tpu.memory_space<vmem>>, vector<256x128xbf16>
    %cst_9 = arith.constant dense<0.000000e+00> : vector<64x128xf32>
    %13 = tpu.matmul %11, %12, %cst_9 {dimension_numbers = #tpu.dot_dimension_numbers<[1], [0], [0], [1], [0, 0, 1, 1], [], []>} : vector<64x256xbf16>, vector<256x128xbf16>, vector<64x128xf32> -> vector<64x128xf32>
    %c0_10 = arith.constant 0 : index
    %c0_11 = arith.constant 0 : index
    %14 = vector.load %arg5[%c0_10, %c0_11] : memref<1x256xf32, #tpu.memory_space<vmem>>, vector<1x128xf32>
    %15 = vector.broadcast %14 : vector<1x128xf32> to vector<64x128xf32>
    %16 = arith.addf %13, %15 : vector<64x128xf32>
    %17 = vector.extract_strided_slice %10 {offsets = [0, 256], sizes = [64, 256], strides = [1, 1]} : vector<64x512xbf16> to vector<64x256xbf16>
    %c256 = arith.constant 256 : index
    %c128 = arith.constant 128 : index
    %18 = vector.load %arg4[%c256, %c128] : memref<512x256xbf16, #tpu.memory_space<vmem>>, vector<256x128xbf16>
    %cst_12 = arith.constant dense<0.000000e+00> : vector<64x128xf32>
    %19 = tpu.matmul %17, %18, %cst_12 {dimension_numbers = #tpu.dot_dimension_numbers<[1], [0], [0], [1], [0, 0, 1, 1], [], []>} : vector<64x256xbf16>, vector<256x128xbf16>, vector<64x128xf32> -> vector<64x128xf32>
    %c0_13 = arith.constant 0 : index
    %c128_14 = arith.constant 128 : index
    %20 = vector.load %arg5[%c0_13, %c128_14] : memref<1x256xf32, #tpu.memory_space<vmem>>, vector<1x128xf32>
    %21 = vector.broadcast %20 : vector<1x128xf32> to vector<64x128xf32>
    %22 = arith.addf %19, %21 : vector<64x128xf32>
    %cst_15 = arith.constant 0.000000e+00 : f32
    %23 = vector.broadcast %cst_15 : f32 to vector<64x128xf32>
    %24 = arith.maximumf %16, %23 : vector<64x128xf32>
    %cst_16 = arith.constant 0.000000e+00 : f32
    %25 = vector.broadcast %cst_16 : f32 to vector<64x128xf32>
    %26 = arith.maximumf %22, %25 : vector<64x128xf32>
    %27 = tpu.concatenate %24, %26 in 1 : vector<64x128xf32>, vector<64x128xf32> -> vector<64x256xf32>
    %28 = arith.truncf %27 : vector<64x256xf32> to vector<64x256xbf16>
    %c0_17 = arith.constant 0 : index
    %c0_18 = arith.constant 0 : index
    %29 = vector.load %arg6[%c0_17, %c0_18] : memref<256x2xbf16, #tpu.memory_space<vmem>>, vector<256x2xbf16>
    %cst_19 = arith.constant dense<0.000000e+00> : vector<64x2xf32>
    %30 = tpu.matmul %28, %29, %cst_19 {dimension_numbers = #tpu.dot_dimension_numbers<[1], [0], [0], [1], [0, 0, 1, 1], [], []>} : vector<64x256xbf16>, vector<256x2xbf16>, vector<64x2xf32> -> vector<64x2xf32>
    %c0_20 = arith.constant 0 : index
    %c0_21 = arith.constant 0 : index
    %31 = vector.load %arg7[%c0_20, %c0_21] : memref<1x2xf32, #tpu.memory_space<vmem>>, vector<1x2xf32>
    %32 = vector.broadcast %31 : vector<1x2xf32> to vector<64x2xf32>
    %33 = arith.addf %30, %32 : vector<64x2xf32>
    %34 = vector.extract_strided_slice %33 {offsets = [0, 0], sizes = [64, 1], strides = [1, 1]} : vector<64x2xf32> to vector<64x1xf32>
    %35 = vector.shape_cast %34 : vector<64x1xf32> to vector<8x8xf32>
    %36 = vector.extract_strided_slice %33 {offsets = [0, 1], sizes = [64, 1], strides = [1, 1]} : vector<64x2xf32> to vector<64x1xf32>
    %37 = vector.shape_cast %36 : vector<64x1xf32> to vector<8x8xf32>
    %cst_22 = arith.constant 0.000000e+00 : f32
    %38 = vector.broadcast %cst_22 : f32 to vector<8x8xf32>
    %39 = arith.subf %38, %35 : vector<8x8xf32>
    %40 = math.exp %39 : vector<8x8xf32>
    %cst_23 = arith.constant 1.000000e+00 : f32
    %41 = vector.broadcast %cst_23 : f32 to vector<8x8xf32>
    %42 = arith.addf %41, %40 : vector<8x8xf32>
    %43 = tpu.reciprocal %42 {approx = true} : vector<8x8xf32> -> vector<8x8xf32>
    %cst_24 = arith.constant dense<0xFF800000> : vector<8xf32>
    %44 = vector.multi_reduction <maximumf>, %37, %cst_24 [1] : vector<8x8xf32> to vector<8xf32>
    %45 = vector.shape_cast %44 : vector<8xf32> to vector<8x1xf32>
    %46 = vector.broadcast %45 : vector<8x1xf32> to vector<8x8xf32>
    %47 = arith.subf %37, %46 : vector<8x8xf32>
    %48 = math.exp %47 : vector<8x8xf32>
    %cst_25 = arith.constant dense<0.000000e+00> : vector<8xf32>
    %49 = vector.multi_reduction <add>, %48, %cst_25 [1] : vector<8x8xf32> to vector<8xf32>
    %50 = vector.shape_cast %49 : vector<8xf32> to vector<8x1xf32>
    %51 = vector.broadcast %50 : vector<8x1xf32> to vector<8x8xf32>
    %52 = arith.divf %48, %51 : vector<8x8xf32>
    %c0_26 = arith.constant 0 : index
    %c0_27 = arith.constant 0 : index
    %53 = vector.load %arg9[%c0_26, %c0_27] : memref<8x8xf32, #tpu.memory_space<vmem>>, vector<8x8xf32>
    tpu.vector_store %arg9[%c0_26, %c0_27], %43 {strides = array<i32>} : memref<8x8xf32, #tpu.memory_space<vmem>>, vector<8x8xf32>,
    %54 = arith.mulf %43, %52 : vector<8x8xf32>
    %cst_28 = arith.constant dense<0.000000e+00> : vector<8xf32>
    %55 = vector.multi_reduction <add>, %54, %cst_28 [1] : vector<8x8xf32> to vector<8xf32>
    %56 = vector.shape_cast %55 : vector<8xf32> to vector<8x1xf32>
    %c0_29 = arith.constant 0 : index
    %c0_30 = arith.constant 0 : index
    %57 = vector.load %arg8[%c0_29, %c0_30] : memref<8x1xf32, #tpu.memory_space<vmem>>, vector<8x1xf32>
    tpu.vector_store %arg8[%c0_29, %c0_30], %56 {strides = array<i32>} : memref<8x1xf32, #tpu.memory_space<vmem>>, vector<8x1xf32>,
    return
  }
  func.func @transform_0(%arg0: i32) -> (i32, i32, i32) {
    %c0_i32 = arith.constant 0 : i32
    %c0_i32_0 = arith.constant 0 : i32
    %c0_i32_1 = arith.constant 0 : i32
    return %arg0, %c0_i32, %c0_i32_0 : i32, i32, i32
  }
  func.func @transform_1(%arg0: i32) -> (i32, i32) {
    %c0_i32 = arith.constant 0 : i32
    %c0_i32_0 = arith.constant 0 : i32
    %c0_i32_1 = arith.constant 0 : i32
    return %c0_i32, %c0_i32_0 : i32, i32
  }
  func.func @transform_2(%arg0: i32) -> (i32, i32) {
    %c0_i32 = arith.constant 0 : i32
    %c0_i32_0 = arith.constant 0 : i32
    %c0_i32_1 = arith.constant 0 : i32
    return %c0_i32, %c0_i32_0 : i32, i32
  }
  func.func @transform_3(%arg0: i32) -> (i32, i32) {
    %c0_i32 = arith.constant 0 : i32
    %c0_i32_0 = arith.constant 0 : i32
    %c0_i32_1 = arith.constant 0 : i32
    return %c0_i32, %c0_i32_0 : i32, i32
  }
  func.func @transform_4(%arg0: i32) -> (i32, i32) {
    %c0_i32 = arith.constant 0 : i32
    %c0_i32_0 = arith.constant 0 : i32
    %c0_i32_1 = arith.constant 0 : i32
    return %c0_i32, %c0_i32_0 : i32, i32
  }
  func.func @transform_5(%arg0: i32) -> (i32, i32) {
    %c0_i32 = arith.constant 0 : i32
    %c0_i32_0 = arith.constant 0 : i32
    %c0_i32_1 = arith.constant 0 : i32
    return %c0_i32, %c0_i32_0 : i32, i32
  }
  func.func @transform_6(%arg0: i32) -> (i32, i32) {
    %c0_i32 = arith.constant 0 : i32
    %c0_i32_0 = arith.constant 0 : i32
    %c0_i32_1 = arith.constant 0 : i32
    return %c0_i32, %c0_i32_0 : i32, i32
  }
  func.func @transform_7(%arg0: i32) -> (i32, i32) {
    %c0_i32 = arith.constant 0 : i32
    %c0_i32_0 = arith.constant 0 : i32
    return %arg0, %c0_i32 : i32, i32
  }
  func.func @transform_8(%arg0: i32) -> (i32, i32) {
    %c0_i32 = arith.constant 0 : i32
    %c0_i32_0 = arith.constant 0 : i32
    return %arg0, %c0_i32 : i32, i32
  }
}

</mosaic_0001>

<bundles_post_ra>
// kernel: cad_forward.1
= control target key start
LH: loop header
LB: loop body
LE: loop exit
PB: predicated region body
PF: predicated region fallthrough
CT: control target
= control target key end

     0   :  { %14 = vsyncpa [#allocation3], 0  ;;  %s2520_s0 = inlined_call_operand.vmem [shape: f32[8,8,128], index: 0, kind: input, shape index: {}]   ;;  %s2521_s1 = inlined_call_operand.hbm [shape: bf16[128,512], index: 1, kind: input, shape index: {}]   ;;  %s2522_s2 = inlined_call_operand.vmem [shape: f32[1,512], index: 2, kind: input, shape index: {}]   ;;  %s2523_s3 = inlined_call_operand.hbm [shape: bf16[512,256], index: 3, kind: input, shape index: {}]   ;;  %s2524_s4 = inlined_call_operand.vmem [shape: f32[1,256], index: 4, kind: input, shape index: {}]   ;;  %s2525_s5 = inlined_call_operand.vmem [shape: bf16[256,2], index: 5, kind: input, shape index: {}]   ;;  %s2526_s6 = inlined_call_operand.vmem [shape: f32[1,2], index: 6, kind: input, shape index: {}]   ;;  %s2527_s7 = inlined_call_operand.vmem [shape: f32[8,1], index: 7, kind: output, shape index: {0}]   ;;  %s2528_s8 = inlined_call_operand.vmem [shape: f32[8,8], index: 8, kind: output, shape index: {1}]  }
   0x1   :  { %15 = vsyncpa [#allocation5], 0  ;;  %s2099_s27 = smov [#allocation2]   ;;  %s2051_s9 = scalar_lea.hbm %s2521_s1, 4096 }
   0x2   :  { %s23_s28 = sshll.u32 %s2099_s27, 4  ;;  %p2052_p0 = scmp.ne.s32.totalorder %s2521_s1, %s2051_s9  ;;  %s24_s28 = int_to_ptr.vmem [resolvable:$true] %s23_s28 }
   0x3   :  { %p2055_p1 = scmp.lt.u32.totalorder %s2051_s9, %s2521_s1 }
   0x5   :  { %p2057_p2 = pnand %p2055_p1, %p2052_p0 }
   0x7   :  { %2060 = shalt.err (!%p2057_p2)
}
   0x8   :  { %s2061_s14 = scalar_lea.vmem %s24_s28, 4096  ;;  %p2066_p4 = scmp.lt.s32.totalorder %s24_s28, %s24_s28 }
   0x9   :  { %p2062_p3 = scmp.ne.s32.totalorder %s24_s28, %s2061_s14  ;;  %p2067_p5 = scmp.lt.s32.totalorder %s2061_s14, %s2061_s14 }
   0xb   :  { %p2068_p6 = por %p2067_p5, %p2066_p4 }
   0xd   :  { %p2069_p7 = pnand %p2068_p6, %p2062_p3 }
   0xf   :  { %2072 = shalt.err (!%p2069_p7)
}
  0x10   :  { %s2100_s15 = smov 256   ;;  %s2101_s16 = smov 16  }
  0x11   :  { %29 = dma.hbm_to_vmem [thread:$0]  %s2521_s1, 4096, %s24_s28, [#allocation3], %s2100_s15, %s2100_s15, %s2101_s16  }
  0x12   :  { %s2102_s19 = smov [#allocation4]   ;;  %s2073_s23 = scalar_lea.hbm %s2523_s3, 8192 }
  0x13   :  { %s37_s20 = sshll.u32 %s2102_s19, 4  ;;  %p2074_p8 = scmp.ne.s32.totalorder %s2523_s3, %s2073_s23  ;;  %s38_s20 = int_to_ptr.vmem [resolvable:$true] %s37_s20 }
  0x14   :  { %p2077_p9 = scmp.lt.u32.totalorder %s2073_s23, %s2523_s3 }
  0x16   :  { %p2079_p10 = pnand %p2077_p9, %p2074_p8 }
  0x18   :  { %2082 = shalt.err (!%p2079_p10)
}
  0x19   :  { %s2083_s29 = scalar_lea.vmem %s38_s20, 8192  ;;  %p2088_p12 = scmp.lt.s32.totalorder %s38_s20, %s38_s20 }
  0x1a   :  { %p2084_p11 = scmp.ne.s32.totalorder %s38_s20, %s2083_s29  ;;  %p2089_p13 = scmp.lt.s32.totalorder %s2083_s29, %s2083_s29 }
  0x1c   :  { %p2090_p0 = por %p2089_p13, %p2088_p12 }
  0x1e   :  { %p2091_p1 = pnand %p2090_p0, %p2084_p11 }
  0x20   :  { %2094 = shalt.err (!%p2091_p1)
}
  0x21   :  { %s2103_s1 = smov 128   ;;  %s2104_s28 = smov 8  }
  0x22   :  { %43 = dma.hbm_to_vmem [thread:$0]  %s2523_s3, 8192, %s38_s20, [#allocation5], %s2103_s1, %s2103_s1, %s2104_s28  }
  0x23   :  { %2095 = dma.done.wait [#allocation3], 4096  }
  0x24   :  { %2096 = vsyncadd [#allocation3], 4294963200 }
  0x25   :  { %2097 = dma.done.wait [#allocation5], 8192  }
  0x26   :  { %2098 = vsyncadd [#allocation5], 4294959104  ;;  %v2105_v0 = vmov 0   ;;  %v1891_v1 = vld [vmem:[#allocation2 + $0x4] ss:$16 sps:$4 sm:$0xff]   ;;  %v58_v34 = vld [vmem:[%s2520_s0 + $0x8] sm:$0xff] }
  0x27   :  { %343 = vmatprep.mubr.bf16.mxu0 %v2105_v0  ;;  %416 = vmatprep.mubr.bf16.mxu1 %v2105_v0  ;;  %v1893_v2 = vld [vmem:[#allocation2 + $0xc] ss:$16 sps:$4 sm:$0xff]   ;;  %v1895_v3 = vld [vmem:[#allocation2] ss:$16 sps:$4 sm:$0xff]   ;;  %v1896_v4 = vld [vmem:[#allocation2 + $0x8] ss:$16 sps:$4 sm:$0xff]  }
  0x28   :  { %311 = vmatprep.subr.bf16.mxu0 %v1891_v1  ;;  %384 = vmatprep.subr.bf16.mxu1 %v1893_v2  ;;  %v1897_v5 = vld [vmem:[#allocation2 + $0x24] ss:$16 sps:$4 sm:$0xff]   ;;  %v1899_v6 = vld [vmem:[#allocation2 + $0x2c] ss:$16 sps:$4 sm:$0xff]   ;;  %v1901_v7 = vld [vmem:[#allocation2 + $0x20] ss:$16 sps:$4 sm:$0xff]  }
  0x29   :  { %312 = vmatpush1.bf16.msra.mxu0 %v1895_v3  ;;  %385 = vmatpush1.bf16.msra.mxu1 %v1896_v4  ;;  %v1902_v8 = vld [vmem:[#allocation2 + $0x28] ss:$16 sps:$4 sm:$0xff]   ;;  %v1903_v9 = vld [vmem:[#allocation2 + $0x44] ss:$16 sps:$4 sm:$0xff]   ;;  %v1905_v10 = vld [vmem:[#allocation2 + $0x4c] ss:$16 sps:$4 sm:$0xff]  }
  0x2a   :  { %313 = vmatprep.subr.bf16.mxu0 %v1897_v5  ;;  %386 = vmatprep.subr.bf16.mxu1 %v1899_v6  ;;  %v1907_v11 = vld [vmem:[#allocation2 + $0x40] ss:$16 sps:$4 sm:$0xff]   ;;  %v1908_v12 = vld [vmem:[#allocation2 + $0x48] ss:$16 sps:$4 sm:$0xff]   ;;  %v1909_v13 = vld [vmem:[#allocation2 + $0x64] ss:$16 sps:$4 sm:$0xff]  }
  0x2b   :  { %v1911_v14 = vld [vmem:[#allocation2 + $0x6c] ss:$16 sps:$4 sm:$0xff]   ;;  %v1913_v15 = vld [vmem:[#allocation2 + $0x60] ss:$16 sps:$4 sm:$0xff]   ;;  %v1914_v16 = vld [vmem:[#allocation2 + $0x68] ss:$16 sps:$4 sm:$0xff]  }
  0x2c   :  { %v1915_v17 = vld [vmem:[#allocation2 + $0x84] ss:$16 sps:$4 sm:$0xff]   ;;  %v1917_v18 = vld [vmem:[#allocation2 + $0x8c] ss:$16 sps:$4 sm:$0xff]   ;;  %v1919_v19 = vld [vmem:[#allocation2 + $0x80] ss:$16 sps:$4 sm:$0xff]  }
  0x2d   :  { %314 = vmatpush1.bf16.msra.mxu0 %v1901_v7  ;;  %387 = vmatpush1.bf16.msra.mxu1 %v1902_v8  ;;  %v1920_v20 = vld [vmem:[#allocation2 + $0x88] ss:$16 sps:$4 sm:$0xff]   ;;  %v1921_v21 = vld [vmem:[#allocation2 + $0xa4] ss:$16 sps:$4 sm:$0xff]   ;;  %v1923_v22 = vld [vmem:[#allocation2 + $0xac] ss:$16 sps:$4 sm:$0xff]  }
  0x2e   :  { %315 = vmatprep.subr.bf16.mxu0 %v1903_v9  ;;  %388 = vmatprep.subr.bf16.mxu1 %v1905_v10  ;;  %v1925_v23 = vld [vmem:[#allocation2 + $0xa0] ss:$16 sps:$4 sm:$0xff]   ;;  %v1926_v24 = vld [vmem:[#allocation2 + $0xa8] ss:$16 sps:$4 sm:$0xff]   ;;  %v1927_v25 = vld [vmem:[#allocation2 + $0xc4] ss:$16 sps:$4 sm:$0xff]  }
  0x2f   :  { %v1929_v26 = vld [vmem:[#allocation2 + $0xcc] ss:$16 sps:$4 sm:$0xff]   ;;  %v1931_v27 = vld [vmem:[#allocation2 + $0xc0] ss:$16 sps:$4 sm:$0xff]   ;;  %v1932_v28 = vld [vmem:[#allocation2 + $0xc8] ss:$16 sps:$4 sm:$0xff]  }
  0x30   :  { %v1933_v29 = vld [vmem:[#allocation2 + $0xe4] ss:$16 sps:$4 sm:$0xff]   ;;  %v1935_v30 = vld [vmem:[#allocation2 + $0xec] ss:$16 sps:$4 sm:$0xff]   ;;  %v1937_v31 = vld [vmem:[#allocation2 + $0xe0] ss:$16 sps:$4 sm:$0xff]  }
  0x31   :  { %316 = vmatpush1.bf16.msra.mxu0 %v1907_v11  ;;  %389 = vmatpush1.bf16.msra.mxu1 %v1908_v12  ;;  %v1938_v32 = vld [vmem:[#allocation2 + $0xe8] ss:$16 sps:$4 sm:$0xff]   ;;  %v57_v33 = vld [vmem:[%s2520_s0] sm:$0xff]  ;;  %v1943_v40 = vld [vmem:[#allocation4 + $0x194] ss:$8 sps:$4 sm:$0xff]   ;;  %vm1235_vm0 = vcmask 1041409  }
  0x32   :  { %317 = vmatprep.subr.bf16.mxu0 %v1909_v13  ;;  %390 = vmatprep.subr.bf16.mxu1 %v1911_v14  ;;  %v1939_v35 = vld [vmem:[#allocation4 + $0x184] ss:$8 sps:$4 sm:$0xff]   ;;  %v1940_v36 = vld [vmem:[#allocation4 + $0x80] ss:$8 sps:$4 sm:$0xff]   ;;  %v1738_v37 = vpack.c.bf16 %v58_v34, %v57_v33  ;;  %v59_v41 = vld [vmem:[%s2520_s0 + $0x10] sm:$0xff]  ;;  %vm1237_vm1 = vcmask 1042434  }
  0x33   :  { %v1941_v38 = vld [vmem:[#allocation4 + $0x104] ss:$8 sps:$4 sm:$0xff]   ;;  %v1942_v39 = vld [vmem:[#allocation4] ss:$8 sps:$4 sm:$0xff]   ;;  %v60_v42 = vld [vmem:[%s2520_s0 + $0x18] sm:$0xff]  ;;  %vm1239_vm2 = vcmask 1043459  }
  0x34   :  { %v1944_v43 = vld [vmem:[#allocation4 + $0x90] ss:$8 sps:$4 sm:$0xff]   ;;  %v1945_v44 = vld [vmem:[#allocation4 + $0x114] ss:$8 sps:$4 sm:$0xff]   ;;  %v1947_v46 = vld [vmem:[#allocation4 + $0x1a4] ss:$8 sps:$4 sm:$0xff]   ;;  %v1739_v48 = vpack.c.bf16 %v60_v42, %v59_v41 }
  0x35   :  { %318 = vmatpush1.bf16.msra.mxu0 %v1913_v15  ;;  %391 = vmatpush1.bf16.msra.mxu1 %v1914_v16  ;;  %v1946_v45 = vld [vmem:[#allocation4 + $0x10] ss:$8 sps:$4 sm:$0xff]   ;;  %v1948_v47 = vld [vmem:[#allocation4 + $0xa0] ss:$8 sps:$4 sm:$0xff]   ;;  %v1949_v49 = vld [vmem:[#allocation4 + $0x124] ss:$8 sps:$4 sm:$0xff]   ;;  %v107_v15 = vlaneseq }
  0x36   :  { %319 = vmatprep.subr.bf16.mxu0 %v1915_v17  ;;  %392 = vmatprep.subr.bf16.mxu1 %v1917_v18  ;;  %v1950_v50 = vld [vmem:[#allocation4 + $0x20] ss:$8 sps:$4 sm:$0xff]   ;;  %v1951_v51 = vld [vmem:[#allocation4 + $0x1b4] ss:$8 sps:$4 sm:$0xff]   ;;  %v1952_v54 = vld [vmem:[#allocation4 + $0xb0] ss:$8 sps:$4 sm:$0xff]  }
  0x37   :  { %v61_v52 = vld [vmem:[%s2520_s0 + $0x20] sm:$0xff]  ;;  %v62_v53 = vld [vmem:[%s2520_s0 + $0x28] sm:$0xff]  ;;  %v1953_v55 = vld [vmem:[#allocation4 + $0x134] ss:$8 sps:$4 sm:$0xff]   ;;  %v2213_v16 = vshrl.u32 %v107_v15, 7  ;;  %vm1241_vm3 = vcmask 1044484  }
  0x38   :  { %v1954_v56 = vld [vmem:[#allocation4 + $0x30] ss:$8 sps:$4 sm:$0xff]   ;;  %v1955_v57 = vld [vmem:[#allocation4 + $0x1c4] ss:$8 sps:$4 sm:$0xff]   ;;  %v1956_v58 = vld [vmem:[#allocation4 + $0xc0] ss:$8 sps:$4 sm:$0xff]   ;;  %v1740_v59 = vpack.c.bf16 %v62_v53, %v61_v52 }
  0x39   :  { %320 = vmatpush1.bf16.msra.mxu0 %v1919_v19  ;;  %393 = vmatpush1.bf16.msra.mxu1 %v1920_v20  ;;  %v1957_v60 = vld [vmem:[#allocation4 + $0x144] ss:$8 sps:$4 sm:$0xff]   ;;  %v1958_v61 = vld [vmem:[#allocation4 + $0x40] ss:$8 sps:$4 sm:$0xff]   ;;  %v1959_v62 = vld [vmem:[#allocation4 + $0x1d4] ss:$8 sps:$4 sm:$0xff]  }
  0x3a   :  { %321 = vmatprep.subr.bf16.mxu0 %v1921_v21  ;;  %394 = vmatprep.subr.bf16.mxu1 %v1923_v22  ;;  %v1960_v63 = vld [vmem:[#allocation4 + $0xd0] ss:$8 sps:$4 sm:$0xff]   ;;  %v1961_v3 = vld [vmem:[#allocation4 + $0x154] ss:$8 sps:$4 sm:$0xff]   ;;  %v1963_v6 = vld [vmem:[#allocation4 + $0x1e4] ss:$8 sps:$4 sm:$0xff]  }
  0x3b   :  { %v63_v1 = vld [vmem:[%s2520_s0 + $0x30] sm:$0xff]  ;;  %v64_v2 = vld [vmem:[%s2520_s0 + $0x38] sm:$0xff]  ;;  %v1964_v7 = vld [vmem:[#allocation4 + $0xe0] ss:$8 sps:$4 sm:$0xff]   ;;  %v2216_v17 = vsub.s32 0, %v2213_v16  ;;  %v2219_v18 = vsub.s32 2, %v2213_v16 }
  0x3c   :  { %v1741_v4 = vpack.c.bf16 %v64_v2, %v63_v1  ;;  %v1962_v5 = vld [vmem:[#allocation4 + $0x50] ss:$8 sps:$4 sm:$0xff]   ;;  %v1965_v8 = vld [vmem:[#allocation4 + $0x164] ss:$8 sps:$4 sm:$0xff]   ;;  %v1966_v9 = vld [vmem:[#allocation4 + $0x60] ss:$8 sps:$4 sm:$0xff]  }
  0x3d   :  { %322 = vmatpush1.bf16.msra.mxu0 %v1925_v23  ;;  %395 = vmatpush1.bf16.msra.mxu1 %v1926_v24  ;;  %v1967_v10 = vld [vmem:[#allocation4 + $0x1f4] ss:$8 sps:$4 sm:$0xff]   ;;  %v1968_v11 = vld [vmem:[#allocation4 + $0xf0] ss:$8 sps:$4 sm:$0xff]   ;;  %v1971_v14 = vld [vmem:[%s2525_s5 + $0x40] sm:$0xff]   ;;  %v2225_v20 = vsub.s32 1, %v2213_v16 }
  0x3e   :  { %323 = vmatprep.subr.bf16.mxu0 %v1927_v25  ;;  %396 = vmatprep.subr.bf16.mxu1 %v1929_v26  ;;  %v1969_v12 = vld [vmem:[#allocation4 + $0x174] ss:$8 sps:$4 sm:$0xff]   ;;  %v1970_v13 = vld [vmem:[#allocation4 + $0x70] ss:$8 sps:$4 sm:$0xff]   ;;  %v105_v19 = vld [vmem:[%s2522_s2] sm:$0xf] }
  0x3f   :  { %v2228_v21 = vsub.s32 3, %v2213_v16  ;;  %v2231_v22 = vrot.slane %v105_v19, %v2216_v17  ;;  %v2234_v23 = vrot.slane %v105_v19, %v2219_v18  ;;  %v2237_v24 = vrot.slane %v105_v19, %v2225_v20 }
  0x40   :  { %vm1243_vm4 = vcmask 1045509   ;;  %vm1245_vm5 = vcmask 1046534   ;;  %vm1247_vm6 = vcmask 1047559   ;;  %vm1250_vm7 = vcmask 64512  }
  0x41   :  { %324 = vmatpush1.bf16.msra.mxu0 %v1931_v27  ;;  %397 = vmatpush1.bf16.msra.mxu1 %v1932_v28  ;;  %v2240_v25 = vrot.slane %v105_v19, %v2228_v21  ;;  %vm1639_vm8 = vcmask 7168  }
  0x42   :  { %325 = vmatprep.subr.bf16.mxu0 %v1933_v29  ;;  %398 = vmatprep.subr.bf16.mxu1 %v1935_v30 }
  0x45   :  { %326 = vmatpush1.bf16.msra.mxu0 %v1937_v31  ;;  %399 = vmatpush1.bf16.msra.mxu1 %v1938_v32 }
  0x46   :  { %1782 = vmatprep.subr.bf16.mxu1 %v1939_v35  ;;  %1742 = vmatprep.subr.bf16.mxu0 %v1940_v36 }
  0x48   :  { %344 = vmatmul.mubr.bf16.vlgmr.msra.gmra.mrb[0].mxu0 %v1738_v37  ;;  %417 = vmatmul.mubr.bf16.vlgmr.msra.gmra.mrb[0].mxu1 %v1738_v37 }
  0x49   :  { %353 = vmatprep.mubr.bf16.mxu0 %v2105_v0  ;;  %426 = vmatprep.mubr.bf16.mxu1 %v2105_v0 }
  0x4a   :  { %1783 = vmatpush3.bf16.msra.mxu1 %v1941_v38  ;;  %1743 = vmatpush3.bf16.msra.mxu0 %v1942_v39 }
  0x4b   :  { %1784 = vmatprep.subr.bf16.mxu1 %v1943_v40  ;;  %1744 = vmatprep.subr.bf16.mxu0 %v1944_v43 }
  0x4e   :  { %1785 = vmatpush3.bf16.msra.mxu1 %v1945_v44  ;;  %1745 = vmatpush3.bf16.msra.mxu0 %v1946_v45 }
  0x4f   :  { %1786 = vmatprep.subr.bf16.mxu1 %v1947_v46  ;;  %1746 = vmatprep.subr.bf16.mxu0 %v1948_v47 }
  0x50   :  { %354 = vmatmul.mubr.bf16.gmra.mrb[4].mxu0 %v1739_v48  ;;  %427 = vmatmul.mubr.bf16.gmra.mrb[4].mxu1 %v1739_v48 }
  0x51   :  { %363 = vmatprep.mubr.bf16.mxu0 %v2105_v0  ;;  %436 = vmatprep.mubr.bf16.mxu1 %v2105_v0 }
  0x52   :  { %1787 = vmatpush3.bf16.msra.mxu1 %v1949_v49  ;;  %1747 = vmatpush3.bf16.msra.mxu0 %v1950_v50 }
  0x53   :  { %1788 = vmatprep.subr.bf16.mxu1 %v1951_v51  ;;  %1748 = vmatprep.subr.bf16.mxu0 %v1952_v54 }
  0x56   :  { %1789 = vmatpush3.bf16.msra.mxu1 %v1953_v55  ;;  %1749 = vmatpush3.bf16.msra.mxu0 %v1954_v56  ;;  %v1972_v56 = vld [vmem:[%s2525_s5] sm:$0xff]  }
  0x57   :  { %1790 = vmatprep.subr.bf16.mxu1 %v1955_v57  ;;  %1750 = vmatprep.subr.bf16.mxu0 %v1956_v58 }
  0x58   :  { %364 = vmatmul.mubr.bf16.gmra.mrb[8].mxu0 %v1740_v59  ;;  %437 = vmatmul.mubr.bf16.gmra.mrb[8].mxu1 %v1740_v59 }
  0x59   :  { %373 = vmatprep.mubr.bf16.mxu0 %v2105_v0  ;;  %446 = vmatprep.mubr.bf16.mxu1 %v2105_v0 }
  0x5a   :  { %1791 = vmatpush3.bf16.msra.mxu1 %v1957_v60  ;;  %1751 = vmatpush3.bf16.msra.mxu0 %v1958_v61  ;;  %v1973_v61 = vld [vmem:[%s2525_s5 + $0x48] sm:$0xff]  }
  0x5b   :  { %1792 = vmatprep.subr.bf16.mxu1 %v1959_v62  ;;  %1752 = vmatprep.subr.bf16.mxu0 %v1960_v63 }
  0x5e   :  { %1793 = vmatpush3.bf16.msra.mxu1 %v1961_v3  ;;  %1753 = vmatpush3.bf16.msra.mxu0 %v1962_v5 }
  0x5f   :  { %1794 = vmatprep.subr.bf16.mxu1 %v1963_v6  ;;  %1754 = vmatprep.subr.bf16.mxu0 %v1964_v7 }
  0x60   :  { %374 = vmatmul.mubr.bf16.gmra.mrb[12].mxu0 %v1741_v4  ;;  %447 = vmatmul.mubr.bf16.gmra.mrb[12].mxu1 %v1741_v4 }
  0x62   :  { %1795 = vmatpush3.bf16.msra.mxu1 %v1965_v8  ;;  %1755 = vmatpush3.bf16.msra.mxu0 %v1966_v9 }
  0x63   :  { %1796 = vmatprep.subr.bf16.mxu1 %v1967_v10  ;;  %1756 = vmatprep.subr.bf16.mxu0 %v1968_v11  ;;  %v1974_v10 = vld [vmem:[%s2525_s5 + $0x8] sm:$0xff]  }
  0x66   :  { %1797 = vmatpush3.bf16.msra.mxu1 %v1969_v12  ;;  %1757 = vmatpush3.bf16.msra.mxu0 %v1970_v13 }
  0x67   :  { %1822 = vmatprep.subr.bf16.mxu0 %v1971_v14  ;;  %1862 = vmatprep.subr.bf16.mxu1 %v1971_v14  ;;  %v1975_v14 = vld [vmem:[%s2525_s5 + $0x50] sm:$0xff]  }
 0x11b   :  { %v345_v26 = vpop.f32.mrb[0].mxu0  ;;  %v418_v27 = vpop.f32.mrb[0].mxu1 }
 0x11c   :  { %v346_v28 = vadd.f32 %v345_v26, %v2231_v22  ;;  %v419_v29 = vadd.f32 %v418_v27, %v2234_v23  ;;  %v347_v30 = vpop.f32.mrb[1].mxu0  ;;  %v420_v31 = vpop.f32.mrb[1].mxu1 }
 0x11d   :  { %v348_v32 = vadd.f32 %v347_v30, %v2237_v24  ;;  %v421_v33 = vadd.f32 %v420_v31, %v2240_v25  ;;  %v349_v34 = vpop.f32.mrb[2].mxu0  ;;  %v422_v35 = vpop.f32.mrb[2].mxu1 }
 0x11e   :  { %v457_v36 = vmax.f32 %v346_v28, 0.0  ;;  %v350_v37 = vadd.f32 %v349_v34, %v2231_v22  ;;  %v423_v38 = vadd.f32 %v422_v35, %v2234_v23  ;;  %v351_v39 = vpop.f32.mrb[3].mxu0  ;;  %v424_v40 = vpop.f32.mrb[3].mxu1  ;;  %v459_v43 = vmax.f32 %v419_v29, 0.0  ;;  %v1976_v35 = vld [vmem:[%s2525_s5 + $0x10] sm:$0xff]  }
 0x11f   :  { %v352_v41 = vadd.f32 %v351_v39, %v2237_v24  ;;  %v425_v42 = vadd.f32 %v424_v40, %v2240_v25  ;;  %v458_v46 = vmax.f32 %v348_v32, 0.0  ;;  %v460_v47 = vmax.f32 %v421_v33, 0.0  ;;  %v1977_v40 = vld [vmem:[%s2525_s5 + $0x58] sm:$0xff]  }
 0x120   :  { %v461_v44 = vmax.f32 %v350_v37, 0.0  ;;  %v463_v45 = vmax.f32 %v423_v38, 0.0 }
 0x121   :  { %v462_v48 = vmax.f32 %v352_v41, 0.0  ;;  %v464_v49 = vmax.f32 %v425_v42, 0.0 }
 0x122   :  { %v489_v50 = vpack.c.bf16 %v461_v44, %v457_v36  ;;  %v491_v51 = vpack.c.bf16 %v463_v45, %v459_v43 }
 0x123   :  { %v490_v52 = vpack.c.bf16 %v462_v48, %v458_v46  ;;  %v492_v53 = vpack.c.bf16 %v464_v49, %v460_v47  ;;  %v355_v54 = vpop.f32.mrb[4].mxu0  ;;  %v428_v55 = vpop.f32.mrb[4].mxu1 }
 0x124   :  { %v356_v57 = vadd.f32 %v355_v54, %v2231_v22  ;;  %v429_v58 = vadd.f32 %v428_v55, %v2234_v23  ;;  %v357_v59 = vpop.f32.mrb[5].mxu0  ;;  %v430_v60 = vpop.f32.mrb[5].mxu1 }
 0x125   :  { %v358_v62 = vadd.f32 %v357_v59, %v2237_v24  ;;  %v431_v63 = vadd.f32 %v430_v60, %v2240_v25  ;;  %v359_v1 = vpop.f32.mrb[6].mxu0  ;;  %v432_v2 = vpop.f32.mrb[6].mxu1  ;;  %672 = vmatprep.mubr.bf16.mxu0 %v490_v52  ;;  %872 = vmatprep.mubr.bf16.mxu1 %v492_v53  ;;  %v1978_v52 = vld [vmem:[%s2525_s5 + $0x18] sm:$0xff]  }
 0x126   :  { %v465_v3 = vmax.f32 %v356_v57, 0.0  ;;  %v360_v4 = vadd.f32 %v359_v1, %v2231_v22  ;;  %v433_v5 = vadd.f32 %v432_v2, %v2234_v23  ;;  %v361_v6 = vpop.f32.mrb[7].mxu0  ;;  %v434_v7 = vpop.f32.mrb[7].mxu1  ;;  %673 = vmatmul.mubr.bf16.vlgmr.msra.gmra.mrb[16].mxu0 %v489_v50  ;;  %873 = vmatmul.mubr.bf16.vlgmr.msra.gmra.mrb[16].mxu1 %v491_v51  ;;  %v467_v11 = vmax.f32 %v429_v58, 0.0 }
 0x127   :  { %v362_v8 = vadd.f32 %v361_v6, %v2237_v24  ;;  %v435_v9 = vadd.f32 %v434_v7, %v2240_v25  ;;  %1823 = vmatpush3.bf16.msra.mxu0 %v1972_v56  ;;  %1870 = vmatpush3.bf16.msra.mxu1 %v1972_v56  ;;  %v466_v19 = vmax.f32 %v358_v62, 0.0  ;;  %v468_v26 = vmax.f32 %v431_v63, 0.0  ;;  %v1979_v56 = vld [vmem:[%s2525_s5 + $0x60] sm:$0xff]  }
 0x128   :  { %v469_v12 = vmax.f32 %v360_v4, 0.0  ;;  %v471_v13 = vmax.f32 %v433_v5, 0.0  ;;  %1824 = vmatprep.subr.bf16.mxu0 %v1973_v61  ;;  %1863 = vmatprep.subr.bf16.mxu1 %v1973_v61  ;;  %v1980_v4 = vld [vmem:[%s2525_s5 + $0x20] sm:$0xff]  }
 0x129   :  { %v470_v27 = vmax.f32 %v362_v8, 0.0  ;;  %v472_v28 = vmax.f32 %v435_v9, 0.0 }
 0x12a   :  { %v493_v29 = vpack.c.bf16 %v469_v12, %v465_v3  ;;  %v495_v30 = vpack.c.bf16 %v471_v13, %v467_v11 }
 0x12b   :  { %v494_v31 = vpack.c.bf16 %v470_v27, %v466_v19  ;;  %v496_v32 = vpack.c.bf16 %v472_v28, %v468_v26  ;;  %v365_v33 = vpop.f32.mrb[8].mxu0  ;;  %v438_v34 = vpop.f32.mrb[8].mxu1  ;;  %1825 = vmatpush3.bf16.msra.mxu0 %v1974_v10  ;;  %1871 = vmatpush3.bf16.msra.mxu1 %v1974_v10 }
 0x12c   :  { %v366_v36 = vadd.f32 %v365_v33, %v2231_v22  ;;  %v439_v37 = vadd.f32 %v438_v34, %v2234_v23  ;;  %v367_v38 = vpop.f32.mrb[9].mxu0  ;;  %v440_v39 = vpop.f32.mrb[9].mxu1  ;;  %1826 = vmatprep.subr.bf16.mxu0 %v1975_v14  ;;  %1864 = vmatprep.subr.bf16.mxu1 %v1975_v14 }
 0x12d   :  { %v368_v41 = vadd.f32 %v367_v38, %v2237_v24  ;;  %v441_v42 = vadd.f32 %v440_v39, %v2240_v25  ;;  %v369_v43 = vpop.f32.mrb[10].mxu0  ;;  %v442_v44 = vpop.f32.mrb[10].mxu1  ;;  %680 = vmatprep.mubr.bf16.mxu0 %v494_v31  ;;  %880 = vmatprep.mubr.bf16.mxu1 %v496_v32  ;;  %v1983_v39 = vld [vmem:[%s2525_s5 + $0x70] sm:$0xff]  }
 0x12e   :  { %v473_v45 = vmax.f32 %v366_v36, 0.0  ;;  %v370_v46 = vadd.f32 %v369_v43, %v2231_v22  ;;  %v443_v47 = vadd.f32 %v442_v44, %v2234_v23  ;;  %v371_v48 = vpop.f32.mrb[11].mxu0  ;;  %v444_v49 = vpop.f32.mrb[11].mxu1  ;;  %681 = vmatmul.mubr.bf16.gmra.mrb[20].mxu0 %v493_v29  ;;  %881 = vmatmul.mubr.bf16.gmra.mrb[20].mxu1 %v495_v30  ;;  %v475_v53 = vmax.f32 %v439_v37, 0.0 }
 0x12f   :  { %v372_v50 = vadd.f32 %v371_v48, %v2237_v24  ;;  %v445_v51 = vadd.f32 %v444_v49, %v2240_v25  ;;  %1827 = vmatpush3.bf16.msra.mxu0 %v1976_v35  ;;  %1872 = vmatpush3.bf16.msra.mxu1 %v1976_v35  ;;  %v474_v57 = vmax.f32 %v368_v41, 0.0  ;;  %v476_v58 = vmax.f32 %v441_v42, 0.0  ;;  %v1985_v41 = vld [vmem:[%s2525_s5 + $0x78] sm:$0xff]  }
 0x130   :  { %v477_v54 = vmax.f32 %v370_v46, 0.0  ;;  %v479_v55 = vmax.f32 %v443_v47, 0.0  ;;  %1828 = vmatprep.subr.bf16.mxu0 %v1977_v40  ;;  %1865 = vmatprep.subr.bf16.mxu1 %v1977_v40  ;;  %v1984_v40 = vld [vmem:[%s2525_s5 + $0x30] sm:$0xff]   ;;  %v1986_v42 = vld [vmem:[%s2525_s5 + $0x38] sm:$0xff]   ;;  %v2327_v47 = vld [vmem:[%s2524_s4 + $0x1] ss:$0 sm:$0xff] }
 0x131   :  { %v478_v59 = vmax.f32 %v372_v50, 0.0  ;;  %v480_v60 = vmax.f32 %v445_v51, 0.0 }
 0x132   :  { %v497_v61 = vpack.c.bf16 %v477_v54, %v473_v45  ;;  %v499_v62 = vpack.c.bf16 %v479_v55, %v475_v53  ;;  %v2322_v45 = vld [vmem:[%s2524_s4] ss:$0 sm:$0xff] }
 0x133   :  { %v498_v63 = vpack.c.bf16 %v478_v59, %v474_v57  ;;  %v500_v1 = vpack.c.bf16 %v480_v60, %v476_v58  ;;  %v375_v2 = vpop.f32.mrb[12].mxu0  ;;  %v448_v3 = vpop.f32.mrb[12].mxu1  ;;  %1829 = vmatpush3.bf16.msra.mxu0 %v1978_v52  ;;  %1873 = vmatpush3.bf16.msra.mxu1 %v1978_v52 }
 0x134   :  { %v376_v5 = vadd.f32 %v375_v2, %v2231_v22  ;;  %v449_v6 = vadd.f32 %v448_v3, %v2234_v23  ;;  %v377_v7 = vpop.f32.mrb[13].mxu0  ;;  %v450_v8 = vpop.f32.mrb[13].mxu1  ;;  %1830 = vmatprep.subr.bf16.mxu0 %v1979_v56  ;;  %1866 = vmatprep.subr.bf16.mxu1 %v1979_v56 }
 0x135   :  { %v378_v9 = vadd.f32 %v377_v7, %v2237_v24  ;;  %v451_v10 = vadd.f32 %v450_v8, %v2240_v25  ;;  %v379_v11 = vpop.f32.mrb[14].mxu0  ;;  %v452_v12 = vpop.f32.mrb[14].mxu1  ;;  %688 = vmatprep.mubr.bf16.mxu0 %v498_v63  ;;  %888 = vmatprep.mubr.bf16.mxu1 %v500_v1 }
 0x136   :  { %v481_v13 = vmax.f32 %v376_v5, 0.0  ;;  %v380_v14 = vadd.f32 %v379_v11, %v2231_v22  ;;  %v453_v19 = vadd.f32 %v452_v12, %v2234_v23  ;;  %v381_v26 = vpop.f32.mrb[15].mxu0  ;;  %v454_v27 = vpop.f32.mrb[15].mxu1  ;;  %689 = vmatmul.mubr.bf16.gmra.mrb[24].mxu0 %v497_v61  ;;  %889 = vmatmul.mubr.bf16.gmra.mrb[24].mxu1 %v499_v62  ;;  %v483_v30 = vmax.f32 %v449_v6, 0.0 }
 0x137   :  { %v382_v28 = vadd.f32 %v381_v26, %v2237_v24  ;;  %v455_v29 = vadd.f32 %v454_v27, %v2240_v25  ;;  %1831 = vmatpush3.bf16.msra.mxu0 %v1980_v4  ;;  %1874 = vmatpush3.bf16.msra.mxu1 %v1980_v4  ;;  %v482_v33 = vmax.f32 %v378_v9, 0.0  ;;  %v484_v34 = vmax.f32 %v451_v10, 0.0  ;;  %v1981_v24 = vld [vmem:[%s2525_s5 + $0x68] sm:$0xff]  }
 0x138   :  { %v485_v31 = vmax.f32 %v380_v14, 0.0  ;;  %v487_v32 = vmax.f32 %v453_v19, 0.0  ;;  %v1982_v25 = vld [vmem:[%s2525_s5 + $0x28] sm:$0xff]   ;;  %1832 = vmatprep.subr.bf16.mxu0 %v1981_v24  ;;  %1867 = vmatprep.subr.bf16.mxu1 %v1981_v24 }
 0x139   :  { %v486_v35 = vmax.f32 %v382_v28, 0.0  ;;  %v488_v36 = vmax.f32 %v455_v29, 0.0 }
 0x13a   :  { %v501_v22 = vpack.c.bf16 %v485_v31, %v481_v13  ;;  %v503_v37 = vpack.c.bf16 %v487_v32, %v483_v30 }
 0x13b   :  { %v502_v23 = vpack.c.bf16 %v486_v35, %v482_v33  ;;  %v504_v38 = vpack.c.bf16 %v488_v36, %v484_v34  ;;  %1833 = vmatpush3.bf16.msra.mxu0 %v1982_v25  ;;  %1875 = vmatpush3.bf16.msra.mxu1 %v1982_v25 }
 0x13c   :  { %1834 = vmatprep.subr.bf16.mxu0 %v1983_v39  ;;  %1868 = vmatprep.subr.bf16.mxu1 %v1983_v39 }
 0x13d   :  { %696 = vmatprep.mubr.bf16.mxu0 %v502_v23  ;;  %896 = vmatprep.mubr.bf16.mxu1 %v504_v38 }
 0x13e   :  { %697 = vmatmul.mubr.bf16.gmra.mrb[28].mxu0 %v501_v22  ;;  %897 = vmatmul.mubr.bf16.gmra.mrb[28].mxu1 %v503_v37 }
 0x13f   :  { %1835 = vmatpush3.bf16.msra.mxu0 %v1984_v40  ;;  %1876 = vmatpush3.bf16.msra.mxu1 %v1984_v40 }
 0x140   :  { %1836 = vmatprep.subr.bf16.mxu0 %v1985_v41  ;;  %1869 = vmatprep.subr.bf16.mxu1 %v1985_v41 }
 0x143   :  { %1837 = vmatpush3.bf16.msra.mxu0 %v1986_v42  ;;  %1877 = vmatpush3.bf16.msra.mxu1 %v1986_v42 }
 0x1f9   :  { %v1758_v43 = vpop.f32.mrb[16].mxu0  ;;  %v1798_v44 = vpop.f32.mrb[16].mxu1 }
 0x1fa   :  { %v1759_v46 = vpop.f32.mrb[17].mxu0  ;;  %v1799_v48 = vpop.f32.mrb[17].mxu1 }
 0x1fb   :  { %v1760_v49 = vadd.f32 %v1759_v46, %v1758_v43  ;;  %v1800_v50 = vadd.f32 %v1799_v48, %v1798_v44  ;;  %v1761_v51 = vpop.f32.mrb[18].mxu0  ;;  %v1801_v52 = vpop.f32.mrb[18].mxu1 }
 0x1fc   :  { %v1762_v53 = vpop.f32.mrb[19].mxu0  ;;  %v1802_v54 = vpop.f32.mrb[19].mxu1 }
 0x1fd   :  { %v675_v55 = vadd.f32 %v1760_v49, %v2322_v45  ;;  %v875_v56 = vadd.f32 %v1800_v50, %v2327_v47  ;;  %v1763_v57 = vadd.f32 %v1762_v53, %v1761_v51  ;;  %v1803_v58 = vadd.f32 %v1802_v54, %v1801_v52 }
 0x1ff   :  { %v678_v59 = vadd.f32 %v1763_v57, %v2322_v45  ;;  %v878_v60 = vadd.f32 %v1803_v58, %v2327_v47  ;;  %v905_v61 = vmax.f32 %v675_v55, 0.0  ;;  %v913_v62 = vmax.f32 %v875_v56, 0.0 }
 0x201   :  { %v906_v63 = vmax.f32 %v678_v59, 0.0  ;;  %v914_v1 = vmax.f32 %v878_v60, 0.0  ;;  %v1764_v2 = vpop.f32.mrb[20].mxu0  ;;  %v1804_v3 = vpop.f32.mrb[20].mxu1 }
 0x202   :  { %v1765_v4 = vpop.f32.mrb[21].mxu0  ;;  %v1805_v5 = vpop.f32.mrb[21].mxu1 }
 0x203   :  { %v921_v6 = vpack.c.bf16 %v906_v63, %v905_v61  ;;  %v1766_v7 = vadd.f32 %v1765_v4, %v1764_v2  ;;  %v1806_v8 = vadd.f32 %v1805_v5, %v1804_v3  ;;  %v1767_v9 = vpop.f32.mrb[22].mxu0  ;;  %v1807_v10 = vpop.f32.mrb[22].mxu1  ;;  %v922_v11 = vpack.c.bf16 %v914_v1, %v913_v62 }
 0x204   :  { %v1768_v12 = vpop.f32.mrb[23].mxu0  ;;  %v1808_v13 = vpop.f32.mrb[23].mxu1 }
 0x205   :  { %v683_v14 = vadd.f32 %v1766_v7, %v2322_v45  ;;  %v883_v19 = vadd.f32 %v1806_v8, %v2327_v47  ;;  %v1769_v26 = vadd.f32 %v1768_v12, %v1767_v9  ;;  %v1809_v27 = vadd.f32 %v1808_v13, %v1807_v10  ;;  %1096 = vmatprep.mubr.bf16.mxu0 %v922_v11 }
 0x206   :  { %1097 = vmatmul.mubr.bf16.vlgmr.msra.gmra.mrb[32].mxu0 %v921_v6 }
 0x207   :  { %v686_v28 = vadd.f32 %v1769_v26, %v2322_v45  ;;  %v886_v29 = vadd.f32 %v1809_v27, %v2327_v47  ;;  %v907_v30 = vmax.f32 %v683_v14, 0.0  ;;  %v915_v31 = vmax.f32 %v883_v19, 0.0  ;;  %v1721_v27 = vld [vmem:[%s2526_s6] ss:$0 sm:$0xff]  ;;  %s2107_s6 = smov 127  }
 0x208   :  { %v2106_v19 = vmov 1  }
 0x209   :  { %v908_v32 = vmax.f32 %v686_v28, 0.0  ;;  %v916_v33 = vmax.f32 %v886_v29, 0.0  ;;  %v1770_v34 = vpop.f32.mrb[24].mxu0  ;;  %v1810_v35 = vpop.f32.mrb[24].mxu1  ;;  %1887 = vset.pattern.permute.xlu0 %v2106_v19  ;;  %1888 = vset.pattern.permute.xlu1 %v2106_v19 }
 0x20a   :  { %v1771_v36 = vpop.f32.mrb[25].mxu0  ;;  %v1811_v22 = vpop.f32.mrb[25].mxu1 }
 0x20b   :  { %v1772_v37 = vadd.f32 %v1771_v36, %v1770_v34  ;;  %v1812_v23 = vadd.f32 %v1811_v22, %v1810_v35  ;;  %v1773_v38 = vpop.f32.mrb[26].mxu0  ;;  %v1813_v24 = vpop.f32.mrb[26].mxu1  ;;  %v924_v25 = vpack.c.bf16 %v916_v33, %v915_v31  ;;  %v923_v39 = vpack.c.bf16 %v908_v32, %v907_v30 }
 0x20c   :  { %v1774_v40 = vpop.f32.mrb[27].mxu0  ;;  %v1814_v41 = vpop.f32.mrb[27].mxu1 }
 0x20d   :  { %v691_v42 = vadd.f32 %v1772_v37, %v2322_v45  ;;  %v891_v43 = vadd.f32 %v1812_v23, %v2327_v47  ;;  %v1775_v44 = vadd.f32 %v1774_v40, %v1773_v38  ;;  %v1815_v46 = vadd.f32 %v1814_v41, %v1813_v24  ;;  %1104 = vmatprep.mubr.bf16.mxu0 %v924_v25 }
 0x20e   :  { %1105 = vmatmul.mubr.bf16.gmra.mrb[36].mxu0 %v923_v39 }
 0x20f   :  { %v694_v48 = vadd.f32 %v1775_v44, %v2322_v45  ;;  %v894_v49 = vadd.f32 %v1815_v46, %v2327_v47  ;;  %v909_v50 = vmax.f32 %v691_v42, 0.0  ;;  %v917_v51 = vmax.f32 %v891_v43, 0.0 }
 0x211   :  { %v910_v52 = vmax.f32 %v694_v48, 0.0  ;;  %v918_v53 = vmax.f32 %v894_v49, 0.0  ;;  %v1776_v54 = vpop.f32.mrb[28].mxu0  ;;  %v1816_v55 = vpop.f32.mrb[28].mxu1 }
 0x212   :  { %v1777_v56 = vpop.f32.mrb[29].mxu0  ;;  %v1817_v57 = vpop.f32.mrb[29].mxu1 }
 0x213   :  { %v925_v58 = vpack.c.bf16 %v910_v52, %v909_v50  ;;  %v1778_v59 = vadd.f32 %v1777_v56, %v1776_v54  ;;  %v1818_v60 = vadd.f32 %v1817_v57, %v1816_v55  ;;  %v1779_v61 = vpop.f32.mrb[30].mxu0  ;;  %v1819_v62 = vpop.f32.mrb[30].mxu1  ;;  %v926_v63 = vpack.c.bf16 %v918_v53, %v917_v51 }
 0x214   :  { %v1780_v1 = vpop.f32.mrb[31].mxu0  ;;  %v1820_v2 = vpop.f32.mrb[31].mxu1  ;;  %v1202_v57 = vand.u32 127, %v107_v15 }
 0x215   :  { %v699_v3 = vadd.f32 %v1778_v59, %v2322_v45  ;;  %v899_v4 = vadd.f32 %v1818_v60, %v2327_v47  ;;  %v1781_v5 = vadd.f32 %v1780_v1, %v1779_v61  ;;  %v1821_v6 = vadd.f32 %v1820_v2, %v1819_v62  ;;  %1112 = vmatprep.mubr.bf16.mxu1 %v926_v63 }
 0x216   :  { %1113 = vmatmul.mubr.bf16.vlgmr.msra.gmra.mrb[32].mxu1 %v925_v58  ;;  %v2375_v59 = vsub.s32 %v1202_v57, %v2213_v16 }
 0x217   :  { %v702_v7 = vadd.f32 %v1781_v5, %v2322_v45  ;;  %v902_v8 = vadd.f32 %v1821_v6, %v2327_v47  ;;  %v911_v9 = vmax.f32 %v699_v3, 0.0  ;;  %v919_v10 = vmax.f32 %v899_v4, 0.0 }
 0x219   :  { %v912_v11 = vmax.f32 %v702_v7, 0.0  ;;  %v920_v12 = vmax.f32 %v902_v8, 0.0 }
 0x21b   :  { %v928_v13 = vpack.c.bf16 %v920_v12, %v919_v10  ;;  %v927_v14 = vpack.c.bf16 %v912_v11, %v911_v9 }
 0x21d   :  { %1120 = vmatprep.mubr.bf16.mxu1 %v928_v13 }
 0x21e   :  { %1121 = vmatmul.mubr.bf16.gmra.mrb[36].mxu1 %v927_v14 }
 0x2d9   :  { %v1838_v26 = vpop.f32.mrb[32].mxu0 }
 0x2da   :  { %v1839_v28 = vpop.f32.mrb[33].mxu0 }
 0x2db   :  { %v1840_v45 = vadd.f32 %v1839_v28, %v1838_v26  ;;  %v1841_v29 = vpop.f32.mrb[34].mxu0 }
 0x2dc   :  { %v1842_v47 = vpop.f32.mrb[35].mxu0 }
 0x2dd   :  { %v2348_v30 = vadd.f32 %v1840_v45, %v1721_v27  ;;  %v1843_v31 = vadd.f32 %v1842_v47, %v1841_v29 }
 0x2df   :  { %1178 = vperm.xlu0 %1887, %v2348_v30   ;;  %v2351_v32 = vadd.f32 %v1843_v31, %v1721_v27 }
 0x2e1   :  { %v1844_v33 = vpop.f32.mrb[36].mxu0 }
 0x2e2   :  { %v1845_v34 = vpop.f32.mrb[37].mxu0 }
 0x2e3   :  { %v1846_v35 = vadd.f32 %v1845_v34, %v1844_v33  ;;  %v1847_v36 = vpop.f32.mrb[38].mxu0  ;;  %1181 = vperm.xlu0 %1887, %v2351_v32   ;;  %v1273_v34 = vsub.s32 4, %v2213_v16 }
 0x2e4   :  { %v1848_v22 = vpop.f32.mrb[39].mxu0 }
 0x2e5   :  { %v2354_v37 = vadd.f32 %v1846_v35, %v1721_v27  ;;  %v1849_v23 = vadd.f32 %v1848_v22, %v1847_v36 }
 0x2e7   :  { %1184 = vperm.xlu1 %1888, %v2354_v37   ;;  %v2357_v38 = vadd.f32 %v1849_v23, %v1721_v27  ;;  %v1277_v23 = vsub.s32 5, %v2213_v16 }
 0x2e9   :  { %v1850_v24 = vpop.f32.mrb[32].mxu1 }
 0x2ea   :  { %v1851_v25 = vpop.f32.mrb[33].mxu1 }
 0x2eb   :  { %v1852_v39 = vadd.f32 %v1851_v25, %v1850_v24  ;;  %v1853_v40 = vpop.f32.mrb[34].mxu1  ;;  %1187 = vperm.xlu1 %1888, %v2357_v38  }
 0x2ec   :  { %v1854_v41 = vpop.f32.mrb[35].mxu1 }
 0x2ed   :  { %v2360_v42 = vadd.f32 %v1852_v39, %v1721_v27  ;;  %v1855_v43 = vadd.f32 %v1854_v41, %v1853_v40  ;;  %v1281_v40 = vsub.s32 6, %v2213_v16 }
 0x2ef   :  { %v2362_v44 = vadd.f32 %v1855_v43, %v1721_v27  ;;  %1190 = vperm.xlu0 %1887, %v2360_v42  }
 0x2f1   :  { %v1856_v46 = vpop.f32.mrb[36].mxu1  ;;  %1193 = vperm.xlu1 %1888, %v2362_v44  }
 0x2f2   :  { %v1857_v48 = vpop.f32.mrb[37].mxu1 }
 0x2f3   :  { %v1858_v49 = vadd.f32 %v1857_v48, %v1856_v46  ;;  %v1859_v50 = vpop.f32.mrb[38].mxu1 }
 0x2f4   :  { %v1860_v51 = vpop.f32.mrb[39].mxu1 }
 0x2f5   :  { %v2366_v52 = vadd.f32 %v1858_v49, %v1721_v27  ;;  %v1861_v53 = vadd.f32 %v1860_v51, %v1859_v50  ;;  %v1285_v49 = vsub.s32 7, %v2213_v16 }
 0x2f7   :  { %v2368_v54 = vadd.f32 %v1861_v53, %v1721_v27  ;;  %1196 = vperm.xlu0 %1887, %v2366_v52  }
 0x2f9   :  { %1199 = vperm.xlu1 %1888, %v2368_v54  }
 0x2fb   :  { %1889 = vset.pattern.permute.xlu0 %v2105_v0 }
 0x35e   :  { %v1179_v55 = vpop.permute.xlu0 %1178 }
 0x35f   :  { %v1206_v1 = vrot.slane %v1179_v55, %v2375_v59 }
 0x362   :  { %v1182_v58 = vpop.permute.xlu0 %1181 }
 0x363   :  { %v1210_v61 = vrot.slane %v1182_v58, %v2375_v59 }
 0x365   :  { %v1236_v4 = vsel %vm1235_vm0, %v1210_v61, %v1206_v1 }
 0x366   :  { %v1185_v56 = vpop.permute.xlu1 %1184 }
 0x367   :  { %v1214_v63 = vrot.slane %v1185_v56, %v2375_v59 }
 0x369   :  { %v1238_v5 = vsel %vm1237_vm1, %v1214_v63, %v1236_v4 }
 0x36a   :  { %v1188_v60 = vpop.permute.xlu1 %1187 }
 0x36b   :  { %v1218_v2 = vrot.slane %v1188_v60, %v2375_v59 }
 0x36d   :  { %v1240_v6 = vsel %vm1239_vm2, %v1218_v2, %v1238_v5 }
 0x36e   :  { %v1191_v62 = vpop.permute.xlu0 %1190 }
 0x36f   :  { %v1222_v3 = vrot.slane %v1191_v62, %v2375_v59 }
 0x370   :  { %v1194_v15 = vpop.permute.xlu1 %1193 }
 0x371   :  { %v1226_v7 = vrot.slane %v1194_v15, %v2375_v59  ;;  %v1242_v8 = vsel %vm1241_vm3, %v1222_v3, %v1240_v6 }
 0x373   :  { %v1244_v11 = vsel %vm1243_vm4, %v1226_v7, %v1242_v8 }
 0x376   :  { %v1197_v9 = vpop.permute.xlu0 %1196 }
 0x377   :  { %v1230_v10 = vrot.slane %v1197_v9, %v2375_v59 }
 0x378   :  { %v1200_v12 = vpop.permute.xlu1 %1199 }
 0x379   :  { %v1234_v13 = vrot.slane %v1200_v12, %v2375_v59  ;;  %v1246_v14 = vsel %vm1245_vm5, %v1230_v10, %v1244_v11 }
 0x37b   :  { %v1248_v19 = vsel %vm1247_vm6, %v1234_v13, %v1246_v14 }
 0x37c   :  { %v1251_v26 = vsel %vm1250_vm7, %v1248_v19, -inf }
 0x37d   :  { %1252 = vmax.xlane.f32.xlu0 %v1251_v26 }
 0x40a   :  { %v1253_v27 = vpop.xlane.xlu0 %1252 }
 0x40b   :  { %v1258_v28 = vrot.slane %v1253_v27, %v2216_v17  ;;  %v1262_v45 = vrot.slane %v1253_v27, %v2225_v20  ;;  %v1266_v29 = vrot.slane %v1253_v27, %v2219_v18  ;;  %v1270_v35 = vrot.slane %v1253_v27, %v2228_v21 }
 0x40c   :  { %v1274_v24 = vrot.slane %v1253_v27, %v1273_v34  ;;  %v1278_v41 = vrot.slane %v1253_v27, %v1277_v23  ;;  %v1282_v50 = vrot.slane %v1253_v27, %v1281_v40  ;;  %v1286_v56 = vrot.slane %v1253_v27, %v1285_v49 }
 0x40d   :  { %v1295_v47 = vsub.f32 %v2348_v30, %v1258_v28  ;;  %v1296_v31 = vsub.f32 %v2351_v32, %v1262_v45  ;;  %v1297_v36 = vsub.f32 %v2354_v37, %v1266_v29  ;;  %v1298_v25 = vsub.f32 %v2357_v38, %v1270_v35 }
 0x40e   :  { %v1299_v43 = vsub.f32 %v2360_v42, %v1274_v24  ;;  %v1300_v51 = vsub.f32 %v2362_v44, %v1278_v41  ;;  %v1301_v57 = vsub.f32 %v2366_v52, %v1282_v50  ;;  %v1302_v61 = vsub.f32 %v2368_v54, %v1286_v56 }
 0x40f   :  { %v1303_v33 = vmul.f32 1.442695, %v1295_v47  ;;  %v1305_v22 = vmul.f32 1.442695, %v1296_v31  ;;  %v1307_v39 = vmul.f32 1.442695, %v1297_v36 }
 0x410   :  { %v1309_v46 = vmul.f32 1.442695, %v1298_v25  ;;  %v1311_v53 = vmul.f32 1.442695, %v1299_v43  ;;  %v1313_v58 = vmul.f32 1.442695, %v1300_v51 }
 0x411   :  { %1987 = vpow2.f32 %v1303_v33  ;;  %v1315_v62 = vmul.f32 1.442695, %v1301_v57  ;;  %v1317_v1 = vmul.f32 1.442695, %v1302_v61 }
 0x412   :  { %1989 = vpow2.f32 %v1305_v22 }
 0x413   :  { %1991 = vpow2.f32 %v1307_v39 }
 0x414   :  { %1993 = vpow2.f32 %v1309_v46 }
 0x415   :  { %1995 = vpow2.f32 %v1311_v53 }
 0x416   :  { %1997 = vpow2.f32 %v1313_v58 }
 0x417   :  { %1999 = vpow2.f32 %v1315_v62 }
 0x418   :  { %2001 = vpow2.f32 %v1317_v1 }
 0x41b   :  { %v2409_v48 = vpop.eup %1987 }
 0x41c   :  { %1328 = vperm.xlu1 %1888, %v2409_v48   ;;  %v1990_v55 = vpop.eup %1989 }
 0x41d   :  { %v2419_v60 = vpop.eup %1991 }
 0x41e   :  { %v2423_v63 = vpop.eup %1993 }
 0x41f   :  { %v2426_v2 = vpop.eup %1995 }
 0x420   :  { %1331 = vperm.xlu1 %1888, %v1990_v55   ;;  %v2429_v3 = vpop.eup %1997 }
 0x421   :  { %v2432_v15 = vpop.eup %1999 }
 0x422   :  { %v2435_v4 = vpop.eup %2001 }
 0x424   :  { %1334 = vperm.xlu1 %1888, %v2419_v60  }
 0x428   :  { %1337 = vperm.xlu1 %1888, %v2423_v63  }
 0x42c   :  { %1340 = vperm.xlu1 %1888, %v2426_v2  }
 0x430   :  { %1343 = vperm.xlu1 %1888, %v2429_v3  }
 0x434   :  { %1346 = vperm.xlu1 %1888, %v2432_v15  }
 0x438   :  { %1349 = vperm.xlu1 %1888, %v2435_v4  }
 0x43c   :  { %1890 = vset.pattern.permute.xlu1 %v2105_v0 }
 0x49b   :  { %v1329_v5 = vpop.permute.xlu1 %1328 }
 0x49c   :  { %v1354_v13 = vrot.slane %v1329_v5, %v2375_v59 }
 0x49f   :  { %v1332_v6 = vpop.permute.xlu1 %1331 }
 0x4a0   :  { %v1358_v11 = vrot.slane %v1332_v6, %v2375_v59 }
 0x4a2   :  { %v1383_v27 = vsel %vm1235_vm0, %v1358_v11, %v1354_v13 }
 0x4a3   :  { %v1335_v7 = vpop.permute.xlu1 %1334 }
 0x4a4   :  { %v1362_v12 = vrot.slane %v1335_v7, %v2375_v59  ;;  %v1132_v7 = vsub.f32 0.0, %v2357_v38 }
 0x4a6   :  { %v1384_v28 = vsel %vm1237_vm1, %v1362_v12, %v1383_v27 }
 0x4a7   :  { %v1338_v8 = vpop.permute.xlu1 %1337 }
 0x4a8   :  { %v1366_v14 = vrot.slane %v1338_v8, %v2375_v59  ;;  %v1133_v8 = vsub.f32 0.0, %v2360_v42 }
 0x4aa   :  { %v1385_v29 = vsel %vm1239_vm2, %v1366_v14, %v1384_v28  ;;  %v1136_v14 = vsub.f32 0.0, %v2368_v54 }
 0x4ab   :  { %v1341_v9 = vpop.permute.xlu1 %1340 }
 0x4ac   :  { %v1370_v19 = vrot.slane %v1341_v9, %v2375_v59 }
 0x4ae   :  { %v1386_v47 = vsel %vm1241_vm3, %v1370_v19, %v1385_v29 }
 0x4af   :  { %v1344_v10 = vpop.permute.xlu1 %1343 }
 0x4b0   :  { %v1374_v0 = vrot.slane %v1344_v10, %v2375_v59 }
 0x4b2   :  { %v1387_v33 = vsel %vm1243_vm4, %v1374_v0, %v1386_v47 }
 0x4b3   :  { %v1347_v26 = vpop.permute.xlu1 %1346 }
 0x4b4   :  { %v1378_v45 = vrot.slane %v1347_v26, %v2375_v59  ;;  %v1151_v26 = vmul.f32 1.442695, %v1136_v14 }
 0x4b6   :  { %v1388_v36 = vsel %vm1245_vm5, %v1378_v45, %v1387_v33 }
 0x4b7   :  { %v1350_v31 = vpop.permute.xlu1 %1349 }
 0x4b8   :  { %v1382_v35 = vrot.slane %v1350_v31, %v2375_v59 }
 0x4ba   :  { %v1389_v22 = vsel %vm1247_vm6, %v1382_v35, %v1388_v36 }
 0x4bb   :  { %v1391_v24 = vsel %vm1250_vm7, %v1389_v22, 0.0 }
 0x4bc   :  { %1392 = vadd.xlane.f32.xlu0 %v1391_v24 }
 0x549   :  { %v1393_v25 = vpop.xlane.xlu0 %1392 }
 0x54a   :  { %v1402_v39 = vrot.slane %v1393_v25, %v2225_v20  ;;  %v1398_v41 = vrot.slane %v1393_v25, %v2216_v17  ;;  %v1406_v43 = vrot.slane %v1393_v25, %v2219_v18  ;;  %v1410_v46 = vrot.slane %v1393_v25, %v2228_v21 }
 0x54b   :  { %v1414_v50 = vrot.slane %v1393_v25, %v1273_v34  ;;  %v1418_v20 = vrot.slane %v1393_v25, %v1277_v23  ;;  %v1422_v18 = vrot.slane %v1393_v25, %v1281_v40 }
 0x54c   :  { %2003 = vrcp.f32 %v1402_v39 }
 0x54d   :  { %2005 = vrcp.f32 %v1398_v41 }
 0x54e   :  { %2007 = vrcp.f32 %v1406_v43 }
 0x54f   :  { %2009 = vrcp.f32 %v1410_v46 }
 0x550   :  { %2011 = vrcp.f32 %v1414_v50 }
 0x551   :  { %2013 = vrcp.f32 %v1418_v20 }
 0x552   :  { %2015 = vrcp.f32 %v1422_v18 }
 0x556   :  { %v2004_v51 = vpop.eup %2003 }
 0x557   :  { %v2006_v53 = vpop.eup %2005  ;;  %v1438_v56 = vmul.f32 %v2004_v51, %v1990_v55  ;;  %v1426_v55 = vrot.slane %v1393_v25, %v1285_v49  ;;  %v1130_v49 = vsub.f32 0.0, %v2351_v32  ;;  %v1134_v32 = vsub.f32 0.0, %v2362_v44 }
 0x558   :  { %v1436_v17 = vmul.f32 %v2006_v53, %v2409_v48  ;;  %v2008_v57 = vpop.eup %2007 }
 0x559   :  { %1534 = vrot.lane.b32.xlu0 %v1438_v56, %s2107_s6  ;;  %v1440_v21 = vmul.f32 %v2008_v57, %v2419_v60  ;;  %v2010_v34 = vpop.eup %2009  ;;  %2017 = vrcp.f32 %v1426_v55  ;;  %v1139_v5 = vmul.f32 1.442695, %v1130_v49  ;;  %v1147_v11 = vmul.f32 1.442695, %v1134_v32 }
 0x55a   :  { %1532 = vrot.lane.b32.xlu1 %v1436_v17, %s2107_s6  ;;  %v1442_v23 = vmul.f32 %v2010_v34, %v2423_v63  ;;  %v2012_v58 = vpop.eup %2011  ;;  %v1129_v63 = vsub.f32 0.0, %v2348_v30 }
 0x55b   :  { %v1444_v48 = vmul.f32 %v2012_v58, %v2426_v2  ;;  %v2014_v61 = vpop.eup %2013  ;;  %v1131_v2 = vsub.f32 0.0, %v2354_v37  ;;  %2019 = vpow2.f32 %v1139_v5  ;;  %v1135_v37 = vsub.f32 0.0, %v2366_v52 }
 0x55c   :  { %v1446_v62 = vmul.f32 %v2014_v61, %v2429_v3  ;;  %v2016_v40 = vpop.eup %2015  ;;  %v1137_v6 = vmul.f32 1.442695, %v1129_v63 }
 0x55d   :  { %v1448_v60 = vmul.f32 %v2016_v40, %v2432_v15  ;;  %v1141_v3 = vmul.f32 1.442695, %v1131_v2  ;;  %v1143_v15 = vmul.f32 1.442695, %v1132_v7  ;;  %v1149_v38 = vmul.f32 1.442695, %v1135_v37 }
 0x55e   :  { %1536 = vrot.lane.b32.xlu1 %v1440_v21, %s2107_s6  ;;  %2021 = vpow2.f32 %v1137_v6 }
 0x55f   :  { %2023 = vpow2.f32 %v1141_v3 }
 0x560   :  { %2025 = vpow2.f32 %v1143_v15 }
 0x562   :  { %1538 = vrot.lane.b32.xlu1 %v1442_v23, %s2107_s6 }
 0x563   :  { %v2018_v1 = vpop.eup %2017 }
 0x564   :  { %v1450_v16 = vmul.f32 %v2018_v1, %v2435_v4  ;;  %v1145_v4 = vmul.f32 1.442695, %v1133_v8 }
 0x565   :  { %v2020_v9 = vpop.eup %2019 }
 0x566   :  { %1540 = vrot.lane.b32.xlu1 %v1444_v48, %s2107_s6  ;;  %v1154_v30 = vadd.f32 1.0, %v2020_v9  ;;  %2027 = vpow2.f32 %v1145_v4 }
 0x568   :  { %v2022_v10 = vpop.eup %2021  ;;  %2029 = vrcp.f32 %v1154_v30 }
 0x569   :  { %v1153_v12 = vadd.f32 1.0, %v2022_v10  ;;  %v2024_v13 = vpop.eup %2023  ;;  %2031 = vpow2.f32 %v1147_v11 }
 0x56a   :  { %1542 = vrot.lane.b32.xlu1 %v1446_v62, %s2107_s6  ;;  %v1155_v42 = vadd.f32 1.0, %v2024_v13  ;;  %v2026_v19 = vpop.eup %2025 }
 0x56b   :  { %2033 = vrcp.f32 %v1153_v12  ;;  %v1156_v44 = vadd.f32 1.0, %v2026_v19 }
 0x56c   :  { %2035 = vpow2.f32 %v1149_v38 }
 0x56d   :  { %2037 = vrcp.f32 %v1155_v42 }
 0x56e   :  { %1544 = vrot.lane.b32.xlu1 %v1448_v60, %s2107_s6  ;;  %2039 = vpow2.f32 %v1151_v26 }
 0x56f   :  { %2041 = vrcp.f32 %v1156_v44 }
 0x570   :  { %v2028_v27 = vpop.eup %2027 }
 0x571   :  { %v1157_v28 = vadd.f32 1.0, %v2028_v27 }
 0x572   :  { %1546 = vrot.lane.b32.xlu1 %v1450_v16, %s2107_s6  ;;  %v2030_v0 = vpop.eup %2029 }
 0x573   :  { %v2032_v52 = vpop.eup %2031  ;;  %2043 = vrcp.f32 %v1157_v28 }
 0x574   :  { %v1158_v54 = vadd.f32 1.0, %v2032_v52 }
 0x575   :  { %v2034_v29 = vpop.eup %2033 }
 0x576   :  { %v2036_v35 = vpop.eup %2035  ;;  %2045 = vrcp.f32 %v1158_v54 }
 0x577   :  { %v2038_v36 = vpop.eup %2037  ;;  %v1159_v25 = vadd.f32 1.0, %v2036_v35 }
 0x578   :  { %v2040_v39 = vpop.eup %2039 }
 0x579   :  { %v2042_v41 = vpop.eup %2041  ;;  %2047 = vrcp.f32 %v1159_v25  ;;  %v1160_v50 = vadd.f32 1.0, %v2040_v39 }
 0x57b   :  { %2049 = vrcp.f32 %v1160_v50 }
 0x57d   :  { %v2044_v51 = vpop.eup %2043 }
 0x580   :  { %v2046_v20 = vpop.eup %2045 }
 0x583   :  { %v2048_v18 = vpop.eup %2047 }
 0x585   :  { %v2050_v55 = vpop.eup %2049 }
 0x5cb   :  { %v1535_v45 = vpop.permute.xlu0 %1534 }
 0x5cc   :  { %v1557_v47 = vmul.f32 %v2030_v0, %v1535_v45  ;;  %v1533_v31 = vpop.permute.xlu1 %1532 }
 0x5cd   :  { %v1556_v33 = vmul.f32 %v2034_v29, %v1533_v31 }
 0x5ce   :  { %1576 = vperm.xlu1 %1890, %v1557_v47  }
 0x5cf   :  { %1573 = vperm.xlu0 %1889, %v1556_v33  }
 0x5d0   :  { %v1537_v22 = vpop.permute.xlu1 %1536 }
 0x5d1   :  { %v1558_v24 = vmul.f32 %v2038_v36, %v1537_v22 }
 0x5d3   :  { %1579 = vperm.xlu1 %1890, %v1558_v24  }
 0x5d4   :  { %v1539_v43 = vpop.permute.xlu1 %1538 }
 0x5d5   :  { %v1559_v46 = vmul.f32 %v2042_v41, %v1539_v43 }
 0x5d7   :  { %1582 = vperm.xlu0 %1889, %v1559_v46  }
 0x5d8   :  { %v1541_v53 = vpop.permute.xlu1 %1540 }
 0x5d9   :  { %v1560_v56 = vmul.f32 %v2044_v51, %v1541_v53 }
 0x5db   :  { %1585 = vperm.xlu1 %1890, %v1560_v56  }
 0x5dc   :  { %v1543_v17 = vpop.permute.xlu1 %1542 }
 0x5dd   :  { %v1561_v57 = vmul.f32 %v2046_v20, %v1543_v17 }
 0x5df   :  { %1588 = vperm.xlu0 %1889, %v1561_v57  }
 0x5e0   :  { %v1545_v21 = vpop.permute.xlu1 %1544 }
 0x5e1   :  { %v1562_v34 = vmul.f32 %v2048_v18, %v1545_v21 }
 0x5e3   :  { %1591 = vperm.xlu1 %1890, %v1562_v34  }
 0x5e4   :  { %v1547_v23 = vpop.permute.xlu1 %1546 }
 0x5e5   :  { %v1563_v58 = vmul.f32 %v2050_v55, %v1547_v23 }
 0x5e7   :  { %1460 = vperm.xlu1 %1890, %v2034_v29   ;;  %1594 = vperm.xlu0 %1889, %v1563_v58  }
 0x5eb   :  { %1466 = vperm.xlu1 %1890, %v2038_v36   ;;  %1463 = vperm.xlu0 %1889, %v2030_v0  }
 0x5ef   :  { %1469 = vperm.xlu0 %1889, %v2042_v41  }
 0x5f3   :  { %1472 = vperm.xlu0 %1889, %v2044_v51  }
 0x5f7   :  { %1475 = vperm.xlu0 %1889, %v2046_v20  }
 0x5fb   :  { %1478 = vperm.xlu0 %1889, %v2048_v18  }
 0x5ff   :  { %1481 = vperm.xlu0 %1889, %v2050_v55  }
 0x64d   :  { %v1577_v48 = vpop.permute.xlu1 %1576 }
 0x64e   :  { %v1574_v61 = vpop.permute.xlu0 %1573  ;;  %v1603_v1 = vrot.slane %v1577_v48, %v2375_v59 }
 0x64f   :  { %v1599_v16 = vrot.slane %v1574_v61, %v2375_v59 }
 0x651   :  { %v1628_v3 = vsel %vm1235_vm0, %v1603_v1, %v1599_v16 }
 0x652   :  { %v1580_v62 = vpop.permute.xlu1 %1579 }
 0x653   :  { %v1607_v49 = vrot.slane %v1580_v62, %v2375_v59 }
 0x655   :  { %v1629_v15 = vsel %vm1237_vm1, %v1607_v49, %v1628_v3 }
 0x656   :  { %v1583_v40 = vpop.permute.xlu0 %1582 }
 0x657   :  { %v1611_v5 = vrot.slane %v1583_v40, %v2375_v59 }
 0x659   :  { %v1630_v9 = vsel %vm1239_vm2, %v1611_v5, %v1629_v15 }
 0x65a   :  { %v1586_v60 = vpop.permute.xlu1 %1585 }
 0x65b   :  { %v1615_v6 = vrot.slane %v1586_v60, %v2375_v59 }
 0x65d   :  { %v1631_v4 = vsel %vm1241_vm3, %v1615_v6, %v1630_v9 }
 0x65e   :  { %v1589_v63 = vpop.permute.xlu0 %1588 }
 0x65f   :  { %v1619_v7 = vrot.slane %v1589_v63, %v2375_v59 }
 0x661   :  { %v1632_v10 = vsel %vm1243_vm4, %v1619_v7, %v1631_v4 }
 0x662   :  { %v1592_v2 = vpop.permute.xlu1 %1591 }
 0x663   :  { %v1623_v8 = vrot.slane %v1592_v2, %v2375_v59 }
 0x665   :  { %v1633_v11 = vsel %vm1245_vm5, %v1623_v8, %v1632_v10 }
 0x666   :  { %v1595_v32 = vpop.permute.xlu0 %1594  ;;  %v1461_v14 = vpop.permute.xlu1 %1460 }
 0x667   :  { %v1627_v30 = vrot.slane %v1595_v32, %v2375_v59  ;;  %v1486_v27 = vrot.slane %v1461_v14, %v2375_v59 }
 0x669   :  { %v1634_v37 = vsel %vm1247_vm6, %v1627_v30, %v1633_v11 }
 0x66a   :  { %v1464_v12 = vpop.permute.xlu0 %1463  ;;  %v1636_v13 = vsel %vm1250_vm7, %v1634_v37, 0.0  ;;  %v1467_v19 = vpop.permute.xlu1 %1466 }
 0x66b   :  { %1637 = vadd.xlane.f32.xlu1 %v1636_v13  ;;  %v1490_v26 = vrot.slane %v1464_v12, %v2375_v59  ;;  %v1494_v0 = vrot.slane %v1467_v19, %v2375_v59 }
 0x66d   :  { %v1515_v28 = vsel %vm1235_vm0, %v1490_v26, %v1486_v27 }
 0x66e   :  { %v1470_v38 = vpop.permute.xlu0 %1469  ;;  %v1516_v31 = vsel %vm1237_vm1, %v1494_v0, %v1515_v28 }
 0x66f   :  { %v1498_v52 = vrot.slane %v1470_v38, %v2375_v59 }
 0x671   :  { %v1517_v54 = vsel %vm1239_vm2, %v1498_v52, %v1516_v31 }
 0x672   :  { %v1473_v42 = vpop.permute.xlu0 %1472 }
 0x673   :  { %v1502_v45 = vrot.slane %v1473_v42, %v2375_v59 }
 0x675   :  { %v1518_v35 = vsel %vm1241_vm3, %v1502_v45, %v1517_v54 }
 0x676   :  { %v1476_v44 = vpop.permute.xlu0 %1475 }
 0x677   :  { %v1506_v47 = vrot.slane %v1476_v44, %v2375_v59 }
 0x679   :  { %v1519_v22 = vsel %vm1243_vm4, %v1506_v47, %v1518_v35 }
 0x67a   :  { %v1479_v29 = vpop.permute.xlu0 %1478 }
 0x67b   :  { %v1510_v33 = vrot.slane %v1479_v29, %v2375_v59 }
 0x67d   :  { %v1520_v25 = vsel %vm1245_vm5, %v1510_v33, %v1519_v22 }
 0x67e   :  { %v1482_v36 = vpop.permute.xlu0 %1481 }
 0x67f   :  { %v1514_v24 = vrot.slane %v1482_v36, %v2375_v59 }
 0x681   :  { %v1521_v39 = vsel %vm1247_vm6, %v1514_v24, %v1520_v25 }
 0x682   :  { %1523 = vst.msk [vmem:[%s2528_s8] sm:$0xff] %vm1250_vm7, %v1521_v39 }
 0x6f8   :  { %v1638_v41 = vpop.xlane.xlu1 %1637 }
 0x6f9   :  { %1640 = vst.msk [vmem:[%s2527_s7] sm:$0xff] %vm1639_vm8, %v1638_v41 }
 0x6fa   :  { %1649 = vsyncpa [#allocation3], 1 }
 0x6fb   :  { %1650 = vsyncpa [#allocation5], 1 }

</bundles_post_ra>
